<compile_context>
chip_gen: v7x
topology: tpu7x:2x2x1
jax: 0.10.0
libtpu: 0.0.40
codegen_flags: <defaults>
</compile_context>

<pallas_src>
import functools

import jax
import jax.numpy as jnp
from jax import lax
from jax.experimental import pallas as pl
from jax.experimental.pallas import tpu as pltpu


def _text_encoder_kernel(ids_ref, tf_ref, tb_ref, whh_ref, hid_ref, hn_ref,
                         xg_ref, *, T, B, H):
    """Fused embedding-gather + bidirectional LSTM recurrence (VMEM resident).

    ids_ref : SMEM (B*T,) int32 token ids, row-major (index = b*T + t).
    tf_ref  : VMEM (vocab, 8H) f32 — embedding @ W_ih_fwd + b_fwd, placed in the
              forward lanes of the interleaved layout, backward lanes zero.
    tb_ref  : VMEM (vocab, 8H) f32 — same for the backward direction (forward
              lanes zero).  tf_row + tb_row = full gate input for one step.
    whh_ref : VMEM (2H, 8H) f32 block-structured fused recurrent weight so that
              [h_f | h_b] @ whh matches the interleaved gate layout
              [i_f i_b | f_f f_b | o_f o_b | g_f g_b].
    hid_ref : VMEM out (T, B, 2H) — per-timestep hiddens [h_fwd_t | h_bwd_t].
    hn_ref  : VMEM out (B, 2H)   — final state [h_n_fwd | h_n_bwd].
    xg_ref  : VMEM scratch (T, B, 8H) — gathered gate inputs.
    """
    H2 = 2 * H  # per-gate fused width (fwd | bwd)

    # ---- Phase 1: gather gate inputs for every (t, b). Static pre-pass, fully
    # off the recurrence critical path (depends only on ids + tables).
    for t in range(T):
        for b in range(B):
            tok_f = ids_ref[b * T + t]              # forward consumes time t
            tok_b = ids_ref[b * T + (T - 1 - t)]    # backward consumes T-1-t
            xg_ref[t, pl.ds(b, 1), :] = (tf_ref[pl.ds(tok_f, 1), :] +
                                         tb_ref[pl.ds(tok_b, 1), :])

    # ---- Phase 2: fused bidirectional recurrence (one MXU dot per step). ----
    whh = whh_ref[...]                              # hoisted: loaded once

    def step(t, carry):
        h, c = carry                                # each (B, 2H) = [fwd | bwd]
        gates = xg_ref[t] + jnp.dot(h, whh, preferred_element_type=jnp.float32)
        sig = jax.nn.sigmoid(gates[:, :3 * H2])     # i, f, o groups only
        g = jnp.tanh(gates[:, 3 * H2:])             # g group only
        i = sig[:, 0 * H2:1 * H2]
        f = sig[:, 1 * H2:2 * H2]
        o = sig[:, 2 * H2:3 * H2]
        c_new = f * c + i * g
        h_new = o * jnp.tanh(c_new)
        hid_ref[t] = h_new                          # one dense store per step;
        return h_new, c_new                         # bwd half is time-reversed

    h0 = jnp.zeros((B, H2), jnp.float32)
    c0 = jnp.zeros((B, H2), jnp.float32)
    h_fin, _ = lax.fori_loop(0, T, step, (h0, c0), unroll=True)
    hn_ref[...] = h_fin                             # [h_n_fwd | h_n_bwd]

    # ---- Phase 3: un-reverse the backward half's time axis, in place. -------
    lane = lax.broadcasted_iota(jnp.int32, (B, H2), 1)
    is_fwd = lane < H
    for t in range(T // 2):                         # pairwise swap of bwd lanes
        a = hid_ref[t]
        z = hid_ref[T - 1 - t]
        hid_ref[t] = jnp.where(is_fwd, a, z)
        hid_ref[T - 1 - t] = jnp.where(is_fwd, z, a)
    # (odd T: the middle row's backward half is already at the right time)


def _build_pallas_encoder(T, B, H):
    kernel = functools.partial(_text_encoder_kernel, T=T, B=B, H=H)
    return pl.pallas_call(
        kernel,
        out_shape=(jax.ShapeDtypeStruct((T, B, 2 * H), jnp.float32),
                   jax.ShapeDtypeStruct((B, 2 * H), jnp.float32)),
        in_specs=[pl.BlockSpec(memory_space=pltpu.MemorySpace.SMEM),   # ids
                  pl.BlockSpec(memory_space=pltpu.MemorySpace.VMEM),   # table_f
                  pl.BlockSpec(memory_space=pltpu.MemorySpace.VMEM),   # table_b
                  pl.BlockSpec(memory_space=pltpu.MemorySpace.VMEM)],  # whh
        out_specs=(pl.BlockSpec(memory_space=pltpu.MemorySpace.VMEM),
                   pl.BlockSpec(memory_space=pltpu.MemorySpace.VMEM)),
        scratch_shapes=[pltpu.VMEM((T, B, 8 * H), jnp.float32)],
    )


def prepare_fused_params(params):
    """One-time packing (NOT on the forward path).

    Folds embedding @ W_ih (+ b_ih + b_hh) into per-token gate tables and builds
    the fused block recurrent weight, all in the kernel's gate-major interleaved
    column layout [i_f i_b | f_f f_b | o_f o_b | g_f g_b] (tanh group last).
    Done at Precision.HIGHEST so the input projection matches f32 exactly.
    """
    emb = params["embedding"].astype(jnp.float32)            # (V, E)
    H = params["whh_f"].shape[0]
    perm = (0, 1, 3, 2)   # PyTorch gate order [i, f, g, o] -> kernel [i, f, o, g]

    def reorder(w):                                           # (.., 4H)->[i f o g]
        return jnp.concatenate([w[..., g * H:(g + 1) * H] for g in perm], axis=-1)

    def interleave(a4, b4):                                   # (R,4H)x2 -> (R,8H)
        R = a4.shape[0]
        return jnp.concatenate(
            [a4.reshape(R, 4, 1, H), b4.reshape(R, 4, 1, H)], axis=2
        ).reshape(R, 8 * H)

    def proj_table(wih, b):                                   # (V, 4H), [i f o g]
        t = jnp.dot(emb, wih, precision=jax.lax.Precision.HIGHEST,
                    preferred_element_type=jnp.float32) + b
        return reorder(t)

    tf4 = proj_table(params["wih_f"], params["b_f"])
    tb4 = proj_table(params["wih_b"], params["b_b"])
    zv = jnp.zeros_like(tf4)
    table_f = interleave(tf4, zv)     # fwd lanes live, bwd lanes zero
    table_b = interleave(zv, tb4)     # bwd lanes live, fwd lanes zero

    whh_f4 = reorder(params["whh_f"])
    whh_b4 = reorder(params["whh_b"])
    zh = jnp.zeros_like(whh_f4)
    whh_fused = jnp.concatenate(
        [interleave(whh_f4, zh), interleave(zh, whh_b4)], axis=0)   # (2H, 8H)

    return {"table_f": table_f.astype(jnp.float32),
            "table_b": table_b.astype(jnp.float32),
            "whh_fused": whh_fused.astype(jnp.float32)}


def text_encoder_forward(input_seq, input_lengths, fused):
    """Mirror of TextEncoder.forward.

    Args:
        input_seq: (batch_size, seq_len) int32 token ids
        input_lengths: (batch_size,) int32 (only used for batch_size, like ref)
        fused: output of prepare_fused_params (precomputed tables/weights)
    Returns:
        output:  (batch_size, num_layers * num_directions * hidden_size)
        hiddens: (seq_len, batch_size, num_directions * hidden_size)
    """
    batch_size = input_lengths.shape[0]
    B, T = input_seq.shape
    H = fused["whh_fused"].shape[0] // 2
    ids = input_seq.reshape(-1).astype(jnp.int32)   # row-major: index = b*T + t

    encoder = _build_pallas_encoder(T, B, H)
    hiddens, hn_cat = encoder(ids, fused["table_f"], fused["table_b"],
                              fused["whh_fused"])
    # hn_cat == h_n.transpose(0, 1).reshape(B, -1) for PyTorch's (2, B, H) h_n.
    output = hn_cat.reshape(batch_size, -1)
    return output, hiddens


def _reference_forward(input_seq, input_lengths, params):
    """Pure-JAX reference (direction-by-direction lax.scan) for validation."""
    del input_lengths
    seq_tm = input_seq.T
    emb = jnp.take(params["embedding"], seq_tm, axis=0).astype(jnp.float32)
    T, B, E = emb.shape
    H = params["whh_f"].shape[0]

    def run(xs, wih, whh, b):
        def step(carry, x):
            h, c = carry
            gates = x @ wih + h @ whh + b
            i = jax.nn.sigmoid(gates[:, :H])
            f = jax.nn.sigmoid(gates[:, H:2 * H])
            g = jnp.tanh(gates[:, 2 * H:3 * H])
            o = jax.nn.sigmoid(gates[:, 3 * H:])
            c = f * c + i * g
            h = o * jnp.tanh(c)
            return (h, c), h
        init = (jnp.zeros((B, H), jnp.float32), jnp.zeros((B, H), jnp.float32))
        (h_fin, _), hs = lax.scan(step, init, xs)
        return h_fin, hs

    hnf, hsf = run(emb, params["wih_f"], params["whh_f"], params["b_f"])
    hnb, hsb = run(emb[::-1], params["wih_b"], params["whh_b"], params["b_b"])
    hiddens = jnp.concatenate([hsf, hsb[::-1]], axis=-1)
    output = jnp.concatenate([hnf, hnb], axis=-1)
    return output, hiddens


def init_params(key, vocab_size, embed_size, hidden_size, pad_index=0):
    """Deterministic synthetic init (matches shapes of nn.Embedding + nn.LSTM).

    Gate order in the 4H dim follows PyTorch: [i, f, g, o].  Weights are stored
    transposed ((E,4H)/(H,4H)) and b_ih + b_hh are pre-summed.
    """
    ks = jax.random.split(key, 9)
    k_std = 1.0 / jnp.sqrt(hidden_size)

    emb = jax.random.normal(ks[0], (vocab_size, embed_size), jnp.float32)
    emb = emb.at[pad_index].set(0.0)  # padding_idx row is zeroed

    def u(k, shape):
        return jax.random.uniform(k, shape, jnp.float32, -k_std, k_std)

    return {
        "embedding": emb,
        "wih_f": u(ks[1], (embed_size, 4 * hidden_size)),
        "whh_f": u(ks[2], (hidden_size, 4 * hidden_size)),
        "b_f": (u(ks[3], (1, 4 * hidden_size)) + u(ks[4], (1, 4 * hidden_size))),
        "wih_b": u(ks[5], (embed_size, 4 * hidden_size)),
        "whh_b": u(ks[6], (hidden_size, 4 * hidden_size)),
        "b_b": (u(ks[7], (1, 4 * hidden_size)) + u(ks[8], (1, 4 * hidden_size))),
    }


if __name__ == "__main__":
    VOCAB, EMBED, HIDDEN, PAD = 50, 32, 32, 0
    BATCH, SEQ = 2, 8

    key = jax.random.PRNGKey(0)
    k_params, k_tokens = jax.random.split(key)

    params = init_params(k_params, VOCAB, EMBED, HIDDEN, pad_index=PAD)
    fused = prepare_fused_params(params)   # one-time packing, off the fwd path

    input_seq = jax.random.randint(k_tokens, (BATCH, SEQ), 1, VOCAB, dtype=jnp.int32)
    input_lengths = jnp.array([SEQ, SEQ - 3], dtype=jnp.int32)

    fwd = jax.jit(text_encoder_forward)
    output, hiddens = fwd(input_seq, input_lengths, fused)
    jax.block_until_ready((output, hiddens))

    assert output.shape == (BATCH, 2 * HIDDEN), output.shape
    assert hiddens.shape == (SEQ, BATCH, 2 * HIDDEN), hiddens.shape

    # Numerical check against a pure-JAX reference (loose tol: matmul precision).
    ref_out, ref_hid = jax.jit(
        functools.partial(_reference_forward, params=params))(input_seq, input_lengths)
    assert jnp.allclose(output, ref_out, rtol=5e-2, atol=5e-2)
    assert jnp.allclose(hiddens, ref_hid, rtol=5e-2, atol=5e-2)

    print("KERNEL_OK")
</pallas_src>

<mosaic_0001>
module attributes {stable_mosaic.version = 11 : i64} {
  func.func @_text_encoder_kernel(%arg0: memref<16xi32, #tpu.memory_space<smem>>, %arg1: memref<50x256xf32, #tpu.memory_space<vmem>>, %arg2: memref<50x256xf32, #tpu.memory_space<vmem>>, %arg3: memref<64x256xf32, #tpu.memory_space<vmem>>, %arg4: memref<8x2x64xf32, #tpu.memory_space<vmem>>, %arg5: memref<2x64xf32, #tpu.memory_space<vmem>>, %arg6: memref<8x2x256xf32, #tpu.memory_space<vmem>>) attributes {dimension_semantics = [], scalar_prefetch = 0 : i64, scratch_operands = 1 : i64, tpu.core_type = #tpu.core_type<tc>} {
    %c0 = arith.constant 0 : index
    %0 = memref.load %arg0[%c0] : memref<16xi32, #tpu.memory_space<smem>>
    %c7 = arith.constant 7 : index
    %1 = memref.load %arg0[%c7] : memref<16xi32, #tpu.memory_space<smem>>
    %2 = arith.index_cast %0 : i32 to index
    %c0_0 = arith.constant 0 : index
    %3 = vector.load %arg1[%2, %c0_0] : memref<50x256xf32, #tpu.memory_space<vmem>>, vector<1x256xf32>
    %4 = arith.index_cast %1 : i32 to index
    %c0_1 = arith.constant 0 : index
    %5 = vector.load %arg2[%4, %c0_1] : memref<50x256xf32, #tpu.memory_space<vmem>>, vector<1x256xf32>
    %6 = arith.addf %3, %5 : vector<1x256xf32>
    %c0_2 = arith.constant 0 : index
    %c0_3 = arith.constant 0 : index
    %c0_4 = arith.constant 0 : index
    %7 = vector.load %arg6[%c0_2, %c0_3, %c0_4] : memref<8x2x256xf32, #tpu.memory_space<vmem>>, vector<1x1x256xf32>
    %8 = vector.shape_cast %7 : vector<1x1x256xf32> to vector<1x256xf32>
    %9 = vector.shape_cast %6 : vector<1x256xf32> to vector<1x1x256xf32>
    tpu.vector_store %arg6[%c0_2, %c0_3, %c0_4], %9 {strides = array<i32>} : memref<8x2x256xf32, #tpu.memory_space<vmem>>, vector<1x1x256xf32>,
    %c8 = arith.constant 8 : index
    %10 = memref.load %arg0[%c8] : memref<16xi32, #tpu.memory_space<smem>>
    %c15 = arith.constant 15 : index
    %11 = memref.load %arg0[%c15] : memref<16xi32, #tpu.memory_space<smem>>
    %12 = arith.index_cast %10 : i32 to index
    %c0_5 = arith.constant 0 : index
    %13 = vector.load %arg1[%12, %c0_5] : memref<50x256xf32, #tpu.memory_space<vmem>>, vector<1x256xf32>
    %14 = arith.index_cast %11 : i32 to index
    %c0_6 = arith.constant 0 : index
    %15 = vector.load %arg2[%14, %c0_6] : memref<50x256xf32, #tpu.memory_space<vmem>>, vector<1x256xf32>
    %16 = arith.addf %13, %15 : vector<1x256xf32>
    %c0_7 = arith.constant 0 : index
    %c1 = arith.constant 1 : index
    %c0_8 = arith.constant 0 : index
    %17 = vector.load %arg6[%c0_7, %c1, %c0_8] : memref<8x2x256xf32, #tpu.memory_space<vmem>>, vector<1x1x256xf32>
    %18 = vector.shape_cast %17 : vector<1x1x256xf32> to vector<1x256xf32>
    %19 = vector.shape_cast %16 : vector<1x256xf32> to vector<1x1x256xf32>
    tpu.vector_store %arg6[%c0_7, %c1, %c0_8], %19 {strides = array<i32>} : memref<8x2x256xf32, #tpu.memory_space<vmem>>, vector<1x1x256xf32>,
    %c1_9 = arith.constant 1 : index
    %20 = memref.load %arg0[%c1_9] : memref<16xi32, #tpu.memory_space<smem>>
    %c6 = arith.constant 6 : index
    %21 = memref.load %arg0[%c6] : memref<16xi32, #tpu.memory_space<smem>>
    %22 = arith.index_cast %20 : i32 to index
    %c0_10 = arith.constant 0 : index
    %23 = vector.load %arg1[%22, %c0_10] : memref<50x256xf32, #tpu.memory_space<vmem>>, vector<1x256xf32>
    %24 = arith.index_cast %21 : i32 to index
    %c0_11 = arith.constant 0 : index
    %25 = vector.load %arg2[%24, %c0_11] : memref<50x256xf32, #tpu.memory_space<vmem>>, vector<1x256xf32>
    %26 = arith.addf %23, %25 : vector<1x256xf32>
    %c1_12 = arith.constant 1 : index
    %c0_13 = arith.constant 0 : index
    %c0_14 = arith.constant 0 : index
    %27 = vector.load %arg6[%c1_12, %c0_13, %c0_14] : memref<8x2x256xf32, #tpu.memory_space<vmem>>, vector<1x1x256xf32>
    %28 = vector.shape_cast %27 : vector<1x1x256xf32> to vector<1x256xf32>
    %29 = vector.shape_cast %26 : vector<1x256xf32> to vector<1x1x256xf32>
    tpu.vector_store %arg6[%c1_12, %c0_13, %c0_14], %29 {strides = array<i32>} : memref<8x2x256xf32, #tpu.memory_space<vmem>>, vector<1x1x256xf32>,
    %c9 = arith.constant 9 : index
    %30 = memref.load %arg0[%c9] : memref<16xi32, #tpu.memory_space<smem>>
    %c14 = arith.constant 14 : index
    %31 = memref.load %arg0[%c14] : memref<16xi32, #tpu.memory_space<smem>>
    %32 = arith.index_cast %30 : i32 to index
    %c0_15 = arith.constant 0 : index
    %33 = vector.load %arg1[%32, %c0_15] : memref<50x256xf32, #tpu.memory_space<vmem>>, vector<1x256xf32>
    %34 = arith.index_cast %31 : i32 to index
    %c0_16 = arith.constant 0 : index
    %35 = vector.load %arg2[%34, %c0_16] : memref<50x256xf32, #tpu.memory_space<vmem>>, vector<1x256xf32>
    %36 = arith.addf %33, %35 : vector<1x256xf32>
    %c1_17 = arith.constant 1 : index
    %c1_18 = arith.constant 1 : index
    %c0_19 = arith.constant 0 : index
    %37 = vector.load %arg6[%c1_17, %c1_18, %c0_19] : memref<8x2x256xf32, #tpu.memory_space<vmem>>, vector<1x1x256xf32>
    %38 = vector.shape_cast %37 : vector<1x1x256xf32> to vector<1x256xf32>
    %39 = vector.shape_cast %36 : vector<1x256xf32> to vector<1x1x256xf32>
    tpu.vector_store %arg6[%c1_17, %c1_18, %c0_19], %39 {strides = array<i32>} : memref<8x2x256xf32, #tpu.memory_space<vmem>>, vector<1x1x256xf32>,
    %c2 = arith.constant 2 : index
    %40 = memref.load %arg0[%c2] : memref<16xi32, #tpu.memory_space<smem>>
    %c5 = arith.constant 5 : index
    %41 = memref.load %arg0[%c5] : memref<16xi32, #tpu.memory_space<smem>>
    %42 = arith.index_cast %40 : i32 to index
    %c0_20 = arith.constant 0 : index
    %43 = vector.load %arg1[%42, %c0_20] : memref<50x256xf32, #tpu.memory_space<vmem>>, vector<1x256xf32>
    %44 = arith.index_cast %41 : i32 to index
    %c0_21 = arith.constant 0 : index
    %45 = vector.load %arg2[%44, %c0_21] : memref<50x256xf32, #tpu.memory_space<vmem>>, vector<1x256xf32>
    %46 = arith.addf %43, %45 : vector<1x256xf32>
    %c2_22 = arith.constant 2 : index
    %c0_23 = arith.constant 0 : index
    %c0_24 = arith.constant 0 : index
    %47 = vector.load %arg6[%c2_22, %c0_23, %c0_24] : memref<8x2x256xf32, #tpu.memory_space<vmem>>, vector<1x1x256xf32>
    %48 = vector.shape_cast %47 : vector<1x1x256xf32> to vector<1x256xf32>
    %49 = vector.shape_cast %46 : vector<1x256xf32> to vector<1x1x256xf32>
    tpu.vector_store %arg6[%c2_22, %c0_23, %c0_24], %49 {strides = array<i32>} : memref<8x2x256xf32, #tpu.memory_space<vmem>>, vector<1x1x256xf32>,
    %c10 = arith.constant 10 : index
    %50 = memref.load %arg0[%c10] : memref<16xi32, #tpu.memory_space<smem>>
    %c13 = arith.constant 13 : index
    %51 = memref.load %arg0[%c13] : memref<16xi32, #tpu.memory_space<smem>>
    %52 = arith.index_cast %50 : i32 to index
    %c0_25 = arith.constant 0 : index
    %53 = vector.load %arg1[%52, %c0_25] : memref<50x256xf32, #tpu.memory_space<vmem>>, vector<1x256xf32>
    %54 = arith.index_cast %51 : i32 to index
    %c0_26 = arith.constant 0 : index
    %55 = vector.load %arg2[%54, %c0_26] : memref<50x256xf32, #tpu.memory_space<vmem>>, vector<1x256xf32>
    %56 = arith.addf %53, %55 : vector<1x256xf32>
    %c2_27 = arith.constant 2 : index
    %c1_28 = arith.constant 1 : index
    %c0_29 = arith.constant 0 : index
    %57 = vector.load %arg6[%c2_27, %c1_28, %c0_29] : memref<8x2x256xf32, #tpu.memory_space<vmem>>, vector<1x1x256xf32>
    %58 = vector.shape_cast %57 : vector<1x1x256xf32> to vector<1x256xf32>
    %59 = vector.shape_cast %56 : vector<1x256xf32> to vector<1x1x256xf32>
    tpu.vector_store %arg6[%c2_27, %c1_28, %c0_29], %59 {strides = array<i32>} : memref<8x2x256xf32, #tpu.memory_space<vmem>>, vector<1x1x256xf32>,
    %c3 = arith.constant 3 : index
    %60 = memref.load %arg0[%c3] : memref<16xi32, #tpu.memory_space<smem>>
    %c4 = arith.constant 4 : index
    %61 = memref.load %arg0[%c4] : memref<16xi32, #tpu.memory_space<smem>>
    %62 = arith.index_cast %60 : i32 to index
    %c0_30 = arith.constant 0 : index
    %63 = vector.load %arg1[%62, %c0_30] : memref<50x256xf32, #tpu.memory_space<vmem>>, vector<1x256xf32>
    %64 = arith.index_cast %61 : i32 to index
    %c0_31 = arith.constant 0 : index
    %65 = vector.load %arg2[%64, %c0_31] : memref<50x256xf32, #tpu.memory_space<vmem>>, vector<1x256xf32>
    %66 = arith.addf %63, %65 : vector<1x256xf32>
    %c3_32 = arith.constant 3 : index
    %c0_33 = arith.constant 0 : index
    %c0_34 = arith.constant 0 : index
    %67 = vector.load %arg6[%c3_32, %c0_33, %c0_34] : memref<8x2x256xf32, #tpu.memory_space<vmem>>, vector<1x1x256xf32>
    %68 = vector.shape_cast %67 : vector<1x1x256xf32> to vector<1x256xf32>
    %69 = vector.shape_cast %66 : vector<1x256xf32> to vector<1x1x256xf32>
    tpu.vector_store %arg6[%c3_32, %c0_33, %c0_34], %69 {strides = array<i32>} : memref<8x2x256xf32, #tpu.memory_space<vmem>>, vector<1x1x256xf32>,
    %c11 = arith.constant 11 : index
    %70 = memref.load %arg0[%c11] : memref<16xi32, #tpu.memory_space<smem>>
    %c12 = arith.constant 12 : index
    %71 = memref.load %arg0[%c12] : memref<16xi32, #tpu.memory_space<smem>>
    %72 = arith.index_cast %70 : i32 to index
    %c0_35 = arith.constant 0 : index
    %73 = vector.load %arg1[%72, %c0_35] : memref<50x256xf32, #tpu.memory_space<vmem>>, vector<1x256xf32>
    %74 = arith.index_cast %71 : i32 to index
    %c0_36 = arith.constant 0 : index
    %75 = vector.load %arg2[%74, %c0_36] : memref<50x256xf32, #tpu.memory_space<vmem>>, vector<1x256xf32>
    %76 = arith.addf %73, %75 : vector<1x256xf32>
    %c3_37 = arith.constant 3 : index
    %c1_38 = arith.constant 1 : index
    %c0_39 = arith.constant 0 : index
    %77 = vector.load %arg6[%c3_37, %c1_38, %c0_39] : memref<8x2x256xf32, #tpu.memory_space<vmem>>, vector<1x1x256xf32>
    %78 = vector.shape_cast %77 : vector<1x1x256xf32> to vector<1x256xf32>
    %79 = vector.shape_cast %76 : vector<1x256xf32> to vector<1x1x256xf32>
    tpu.vector_store %arg6[%c3_37, %c1_38, %c0_39], %79 {strides = array<i32>} : memref<8x2x256xf32, #tpu.memory_space<vmem>>, vector<1x1x256xf32>,
    %c4_40 = arith.constant 4 : index
    %80 = memref.load %arg0[%c4_40] : memref<16xi32, #tpu.memory_space<smem>>
    %c3_41 = arith.constant 3 : index
    %81 = memref.load %arg0[%c3_41] : memref<16xi32, #tpu.memory_space<smem>>
    %82 = arith.index_cast %80 : i32 to index
    %c0_42 = arith.constant 0 : index
    %83 = vector.load %arg1[%82, %c0_42] : memref<50x256xf32, #tpu.memory_space<vmem>>, vector<1x256xf32>
    %84 = arith.index_cast %81 : i32 to index
    %c0_43 = arith.constant 0 : index
    %85 = vector.load %arg2[%84, %c0_43] : memref<50x256xf32, #tpu.memory_space<vmem>>, vector<1x256xf32>
    %86 = arith.addf %83, %85 : vector<1x256xf32>
    %c4_44 = arith.constant 4 : index
    %c0_45 = arith.constant 0 : index
    %c0_46 = arith.constant 0 : index
    %87 = vector.load %arg6[%c4_44, %c0_45, %c0_46] : memref<8x2x256xf32, #tpu.memory_space<vmem>>, vector<1x1x256xf32>
    %88 = vector.shape_cast %87 : vector<1x1x256xf32> to vector<1x256xf32>
    %89 = vector.shape_cast %86 : vector<1x256xf32> to vector<1x1x256xf32>
    tpu.vector_store %arg6[%c4_44, %c0_45, %c0_46], %89 {strides = array<i32>} : memref<8x2x256xf32, #tpu.memory_space<vmem>>, vector<1x1x256xf32>,
    %c12_47 = arith.constant 12 : index
    %90 = memref.load %arg0[%c12_47] : memref<16xi32, #tpu.memory_space<smem>>
    %c11_48 = arith.constant 11 : index
    %91 = memref.load %arg0[%c11_48] : memref<16xi32, #tpu.memory_space<smem>>
    %92 = arith.index_cast %90 : i32 to index
    %c0_49 = arith.constant 0 : index
    %93 = vector.load %arg1[%92, %c0_49] : memref<50x256xf32, #tpu.memory_space<vmem>>, vector<1x256xf32>
    %94 = arith.index_cast %91 : i32 to index
    %c0_50 = arith.constant 0 : index
    %95 = vector.load %arg2[%94, %c0_50] : memref<50x256xf32, #tpu.memory_space<vmem>>, vector<1x256xf32>
    %96 = arith.addf %93, %95 : vector<1x256xf32>
    %c4_51 = arith.constant 4 : index
    %c1_52 = arith.constant 1 : index
    %c0_53 = arith.constant 0 : index
    %97 = vector.load %arg6[%c4_51, %c1_52, %c0_53] : memref<8x2x256xf32, #tpu.memory_space<vmem>>, vector<1x1x256xf32>
    %98 = vector.shape_cast %97 : vector<1x1x256xf32> to vector<1x256xf32>
    %99 = vector.shape_cast %96 : vector<1x256xf32> to vector<1x1x256xf32>
    tpu.vector_store %arg6[%c4_51, %c1_52, %c0_53], %99 {strides = array<i32>} : memref<8x2x256xf32, #tpu.memory_space<vmem>>, vector<1x1x256xf32>,
    %c5_54 = arith.constant 5 : index
    %100 = memref.load %arg0[%c5_54] : memref<16xi32, #tpu.memory_space<smem>>
    %c2_55 = arith.constant 2 : index
    %101 = memref.load %arg0[%c2_55] : memref<16xi32, #tpu.memory_space<smem>>
    %102 = arith.index_cast %100 : i32 to index
    %c0_56 = arith.constant 0 : index
    %103 = vector.load %arg1[%102, %c0_56] : memref<50x256xf32, #tpu.memory_space<vmem>>, vector<1x256xf32>
    %104 = arith.index_cast %101 : i32 to index
    %c0_57 = arith.constant 0 : index
    %105 = vector.load %arg2[%104, %c0_57] : memref<50x256xf32, #tpu.memory_space<vmem>>, vector<1x256xf32>
    %106 = arith.addf %103, %105 : vector<1x256xf32>
    %c5_58 = arith.constant 5 : index
    %c0_59 = arith.constant 0 : index
    %c0_60 = arith.constant 0 : index
    %107 = vector.load %arg6[%c5_58, %c0_59, %c0_60] : memref<8x2x256xf32, #tpu.memory_space<vmem>>, vector<1x1x256xf32>
    %108 = vector.shape_cast %107 : vector<1x1x256xf32> to vector<1x256xf32>
    %109 = vector.shape_cast %106 : vector<1x256xf32> to vector<1x1x256xf32>
    tpu.vector_store %arg6[%c5_58, %c0_59, %c0_60], %109 {strides = array<i32>} : memref<8x2x256xf32, #tpu.memory_space<vmem>>, vector<1x1x256xf32>,
    %c13_61 = arith.constant 13 : index
    %110 = memref.load %arg0[%c13_61] : memref<16xi32, #tpu.memory_space<smem>>
    %c10_62 = arith.constant 10 : index
    %111 = memref.load %arg0[%c10_62] : memref<16xi32, #tpu.memory_space<smem>>
    %112 = arith.index_cast %110 : i32 to index
    %c0_63 = arith.constant 0 : index
    %113 = vector.load %arg1[%112, %c0_63] : memref<50x256xf32, #tpu.memory_space<vmem>>, vector<1x256xf32>
    %114 = arith.index_cast %111 : i32 to index
    %c0_64 = arith.constant 0 : index
    %115 = vector.load %arg2[%114, %c0_64] : memref<50x256xf32, #tpu.memory_space<vmem>>, vector<1x256xf32>
    %116 = arith.addf %113, %115 : vector<1x256xf32>
    %c5_65 = arith.constant 5 : index
    %c1_66 = arith.constant 1 : index
    %c0_67 = arith.constant 0 : index
    %117 = vector.load %arg6[%c5_65, %c1_66, %c0_67] : memref<8x2x256xf32, #tpu.memory_space<vmem>>, vector<1x1x256xf32>
    %118 = vector.shape_cast %117 : vector<1x1x256xf32> to vector<1x256xf32>
    %119 = vector.shape_cast %116 : vector<1x256xf32> to vector<1x1x256xf32>
    tpu.vector_store %arg6[%c5_65, %c1_66, %c0_67], %119 {strides = array<i32>} : memref<8x2x256xf32, #tpu.memory_space<vmem>>, vector<1x1x256xf32>,
    %c6_68 = arith.constant 6 : index
    %120 = memref.load %arg0[%c6_68] : memref<16xi32, #tpu.memory_space<smem>>
    %c1_69 = arith.constant 1 : index
    %121 = memref.load %arg0[%c1_69] : memref<16xi32, #tpu.memory_space<smem>>
    %122 = arith.index_cast %120 : i32 to index
    %c0_70 = arith.constant 0 : index
    %123 = vector.load %arg1[%122, %c0_70] : memref<50x256xf32, #tpu.memory_space<vmem>>, vector<1x256xf32>
    %124 = arith.index_cast %121 : i32 to index
    %c0_71 = arith.constant 0 : index
    %125 = vector.load %arg2[%124, %c0_71] : memref<50x256xf32, #tpu.memory_space<vmem>>, vector<1x256xf32>
    %126 = arith.addf %123, %125 : vector<1x256xf32>
    %c6_72 = arith.constant 6 : index
    %c0_73 = arith.constant 0 : index
    %c0_74 = arith.constant 0 : index
    %127 = vector.load %arg6[%c6_72, %c0_73, %c0_74] : memref<8x2x256xf32, #tpu.memory_space<vmem>>, vector<1x1x256xf32>
    %128 = vector.shape_cast %127 : vector<1x1x256xf32> to vector<1x256xf32>
    %129 = vector.shape_cast %126 : vector<1x256xf32> to vector<1x1x256xf32>
    tpu.vector_store %arg6[%c6_72, %c0_73, %c0_74], %129 {strides = array<i32>} : memref<8x2x256xf32, #tpu.memory_space<vmem>>, vector<1x1x256xf32>,
    %c14_75 = arith.constant 14 : index
    %130 = memref.load %arg0[%c14_75] : memref<16xi32, #tpu.memory_space<smem>>
    %c9_76 = arith.constant 9 : index
    %131 = memref.load %arg0[%c9_76] : memref<16xi32, #tpu.memory_space<smem>>
    %132 = arith.index_cast %130 : i32 to index
    %c0_77 = arith.constant 0 : index
    %133 = vector.load %arg1[%132, %c0_77] : memref<50x256xf32, #tpu.memory_space<vmem>>, vector<1x256xf32>
    %134 = arith.index_cast %131 : i32 to index
    %c0_78 = arith.constant 0 : index
    %135 = vector.load %arg2[%134, %c0_78] : memref<50x256xf32, #tpu.memory_space<vmem>>, vector<1x256xf32>
    %136 = arith.addf %133, %135 : vector<1x256xf32>
    %c6_79 = arith.constant 6 : index
    %c1_80 = arith.constant 1 : index
    %c0_81 = arith.constant 0 : index
    %137 = vector.load %arg6[%c6_79, %c1_80, %c0_81] : memref<8x2x256xf32, #tpu.memory_space<vmem>>, vector<1x1x256xf32>
    %138 = vector.shape_cast %137 : vector<1x1x256xf32> to vector<1x256xf32>
    %139 = vector.shape_cast %136 : vector<1x256xf32> to vector<1x1x256xf32>
    tpu.vector_store %arg6[%c6_79, %c1_80, %c0_81], %139 {strides = array<i32>} : memref<8x2x256xf32, #tpu.memory_space<vmem>>, vector<1x1x256xf32>,
    %c7_82 = arith.constant 7 : index
    %140 = memref.load %arg0[%c7_82] : memref<16xi32, #tpu.memory_space<smem>>
    %c0_83 = arith.constant 0 : index
    %141 = memref.load %arg0[%c0_83] : memref<16xi32, #tpu.memory_space<smem>>
    %142 = arith.index_cast %140 : i32 to index
    %c0_84 = arith.constant 0 : index
    %143 = vector.load %arg1[%142, %c0_84] : memref<50x256xf32, #tpu.memory_space<vmem>>, vector<1x256xf32>
    %144 = arith.index_cast %141 : i32 to index
    %c0_85 = arith.constant 0 : index
    %145 = vector.load %arg2[%144, %c0_85] : memref<50x256xf32, #tpu.memory_space<vmem>>, vector<1x256xf32>
    %146 = arith.addf %143, %145 : vector<1x256xf32>
    %c7_86 = arith.constant 7 : index
    %c0_87 = arith.constant 0 : index
    %c0_88 = arith.constant 0 : index
    %147 = vector.load %arg6[%c7_86, %c0_87, %c0_88] : memref<8x2x256xf32, #tpu.memory_space<vmem>>, vector<1x1x256xf32>
    %148 = vector.shape_cast %147 : vector<1x1x256xf32> to vector<1x256xf32>
    %149 = vector.shape_cast %146 : vector<1x256xf32> to vector<1x1x256xf32>
    tpu.vector_store %arg6[%c7_86, %c0_87, %c0_88], %149 {strides = array<i32>} : memref<8x2x256xf32, #tpu.memory_space<vmem>>, vector<1x1x256xf32>,
    %c15_89 = arith.constant 15 : index
    %150 = memref.load %arg0[%c15_89] : memref<16xi32, #tpu.memory_space<smem>>
    %c8_90 = arith.constant 8 : index
    %151 = memref.load %arg0[%c8_90] : memref<16xi32, #tpu.memory_space<smem>>
    %152 = arith.index_cast %150 : i32 to index
    %c0_91 = arith.constant 0 : index
    %153 = vector.load %arg1[%152, %c0_91] : memref<50x256xf32, #tpu.memory_space<vmem>>, vector<1x256xf32>
    %154 = arith.index_cast %151 : i32 to index
    %c0_92 = arith.constant 0 : index
    %155 = vector.load %arg2[%154, %c0_92] : memref<50x256xf32, #tpu.memory_space<vmem>>, vector<1x256xf32>
    %156 = arith.addf %153, %155 : vector<1x256xf32>
    %c7_93 = arith.constant 7 : index
    %c1_94 = arith.constant 1 : index
    %c0_95 = arith.constant 0 : index
    %157 = vector.load %arg6[%c7_93, %c1_94, %c0_95] : memref<8x2x256xf32, #tpu.memory_space<vmem>>, vector<1x1x256xf32>
    %158 = vector.shape_cast %157 : vector<1x1x256xf32> to vector<1x256xf32>
    %159 = vector.shape_cast %156 : vector<1x256xf32> to vector<1x1x256xf32>
    tpu.vector_store %arg6[%c7_93, %c1_94, %c0_95], %159 {strides = array<i32>} : memref<8x2x256xf32, #tpu.memory_space<vmem>>, vector<1x1x256xf32>,
    %c0_96 = arith.constant 0 : index
    %c0_97 = arith.constant 0 : index
    %160 = vector.load %arg3[%c0_96, %c0_97] : memref<64x256xf32, #tpu.memory_space<vmem>>, vector<64x256xf32>
    %cst = arith.constant 0.000000e+00 : f32
    %161 = vector.broadcast %cst : f32 to vector<2x64xf32>
    %cst_98 = arith.constant 0.000000e+00 : f32
    %162 = vector.broadcast %cst_98 : f32 to vector<2x64xf32>
    %c0_i32 = arith.constant 0 : i32
    %163 = arith.index_cast %c0_i32 : i32 to index
    %c0_99 = arith.constant 0 : index
    %c0_100 = arith.constant 0 : index
    %164 = vector.load %arg6[%163, %c0_99, %c0_100] : memref<8x2x256xf32, #tpu.memory_space<vmem>>, vector<1x2x256xf32>
    %165 = vector.shape_cast %164 : vector<1x2x256xf32> to vector<2x256xf32>
    %cst_101 = arith.constant dense<0.000000e+00> : vector<2x256xf32>
    %166 = tpu.matmul %161, %160, %cst_101 {dimension_numbers = #tpu.dot_dimension_numbers<[1], [0], [0], [1], [0, 0, 1, 1], [], []>} : vector<2x64xf32>, vector<64x256xf32>, vector<2x256xf32> -> vector<2x256xf32>
    %167 = arith.addf %165, %166 : vector<2x256xf32>
    %168 = vector.extract_strided_slice %167 {offsets = [0, 0], sizes = [2, 192], strides = [1, 1]} : vector<2x256xf32> to vector<2x192xf32>
    %169 = arith.negf %168 : vector<2x192xf32>
    %170 = math.exp %169 : vector<2x192xf32>
    %cst_102 = arith.constant 1.000000e+00 : f32
    %171 = vector.broadcast %cst_102 : f32 to vector<2x192xf32>
    %172 = arith.addf %171, %170 : vector<2x192xf32>
    %173 = arith.divf %171, %172 : vector<2x192xf32>
    %174 = vector.extract_strided_slice %167 {offsets = [0, 192], sizes = [2, 64], strides = [1, 1]} : vector<2x256xf32> to vector<2x64xf32>
    %175 = math.tanh %174 : vector<2x64xf32>
    %176 = vector.extract_strided_slice %173 {offsets = [0, 0], sizes = [2, 64], strides = [1, 1]} : vector<2x192xf32> to vector<2x64xf32>
    %177 = vector.extract_strided_slice %173 {offsets = [0, 64], sizes = [2, 64], strides = [1, 1]} : vector<2x192xf32> to vector<2x64xf32>
    %178 = vector.extract_strided_slice %173 {offsets = [0, 128], sizes = [2, 64], strides = [1, 1]} : vector<2x192xf32> to vector<2x64xf32>
    %179 = arith.mulf %177, %162 : vector<2x64xf32>
    %180 = arith.mulf %176, %175 : vector<2x64xf32>
    %181 = arith.addf %179, %180 : vector<2x64xf32>
    %182 = math.tanh %181 : vector<2x64xf32>
    %183 = arith.mulf %178, %182 : vector<2x64xf32>
    %184 = arith.index_cast %c0_i32 : i32 to index
    %c0_103 = arith.constant 0 : index
    %c0_104 = arith.constant 0 : index
    %185 = vector.load %arg4[%184, %c0_103, %c0_104] : memref<8x2x64xf32, #tpu.memory_space<vmem>>, vector<1x2x64xf32>
    %186 = vector.shape_cast %185 : vector<1x2x64xf32> to vector<2x64xf32>
    %187 = vector.shape_cast %183 : vector<2x64xf32> to vector<1x2x64xf32>
    tpu.vector_store %arg4[%184, %c0_103, %c0_104], %187 {strides = array<i32>} : memref<8x2x64xf32, #tpu.memory_space<vmem>>, vector<1x2x64xf32>,
    %c1_i32 = arith.constant 1 : i32
    %188 = arith.index_cast %c1_i32 : i32 to index
    %c0_105 = arith.constant 0 : index
    %c0_106 = arith.constant 0 : index
    %189 = vector.load %arg6[%188, %c0_105, %c0_106] : memref<8x2x256xf32, #tpu.memory_space<vmem>>, vector<1x2x256xf32>
    %190 = vector.shape_cast %189 : vector<1x2x256xf32> to vector<2x256xf32>
    %cst_107 = arith.constant dense<0.000000e+00> : vector<2x256xf32>
    %191 = tpu.matmul %183, %160, %cst_107 {dimension_numbers = #tpu.dot_dimension_numbers<[1], [0], [0], [1], [0, 0, 1, 1], [], []>} : vector<2x64xf32>, vector<64x256xf32>, vector<2x256xf32> -> vector<2x256xf32>
    %192 = arith.addf %190, %191 : vector<2x256xf32>
    %193 = vector.extract_strided_slice %192 {offsets = [0, 0], sizes = [2, 192], strides = [1, 1]} : vector<2x256xf32> to vector<2x192xf32>
    %194 = arith.negf %193 : vector<2x192xf32>
    %195 = math.exp %194 : vector<2x192xf32>
    %cst_108 = arith.constant 1.000000e+00 : f32
    %196 = vector.broadcast %cst_108 : f32 to vector<2x192xf32>
    %197 = arith.addf %196, %195 : vector<2x192xf32>
    %198 = arith.divf %196, %197 : vector<2x192xf32>
    %199 = vector.extract_strided_slice %192 {offsets = [0, 192], sizes = [2, 64], strides = [1, 1]} : vector<2x256xf32> to vector<2x64xf32>
    %200 = math.tanh %199 : vector<2x64xf32>
    %201 = vector.extract_strided_slice %198 {offsets = [0, 0], sizes = [2, 64], strides = [1, 1]} : vector<2x192xf32> to vector<2x64xf32>
    %202 = vector.extract_strided_slice %198 {offsets = [0, 64], sizes = [2, 64], strides = [1, 1]} : vector<2x192xf32> to vector<2x64xf32>
    %203 = vector.extract_strided_slice %198 {offsets = [0, 128], sizes = [2, 64], strides = [1, 1]} : vector<2x192xf32> to vector<2x64xf32>
    %204 = arith.mulf %202, %181 : vector<2x64xf32>
    %205 = arith.mulf %201, %200 : vector<2x64xf32>
    %206 = arith.addf %204, %205 : vector<2x64xf32>
    %207 = math.tanh %206 : vector<2x64xf32>
    %208 = arith.mulf %203, %207 : vector<2x64xf32>
    %209 = arith.index_cast %c1_i32 : i32 to index
    %c0_109 = arith.constant 0 : index
    %c0_110 = arith.constant 0 : index
    %210 = vector.load %arg4[%209, %c0_109, %c0_110] : memref<8x2x64xf32, #tpu.memory_space<vmem>>, vector<1x2x64xf32>
    %211 = vector.shape_cast %210 : vector<1x2x64xf32> to vector<2x64xf32>
    %212 = vector.shape_cast %208 : vector<2x64xf32> to vector<1x2x64xf32>
    tpu.vector_store %arg4[%209, %c0_109, %c0_110], %212 {strides = array<i32>} : memref<8x2x64xf32, #tpu.memory_space<vmem>>, vector<1x2x64xf32>,
    %c2_i32 = arith.constant 2 : i32
    %213 = arith.index_cast %c2_i32 : i32 to index
    %c0_111 = arith.constant 0 : index
    %c0_112 = arith.constant 0 : index
    %214 = vector.load %arg6[%213, %c0_111, %c0_112] : memref<8x2x256xf32, #tpu.memory_space<vmem>>, vector<1x2x256xf32>
    %215 = vector.shape_cast %214 : vector<1x2x256xf32> to vector<2x256xf32>
    %cst_113 = arith.constant dense<0.000000e+00> : vector<2x256xf32>
    %216 = tpu.matmul %208, %160, %cst_113 {dimension_numbers = #tpu.dot_dimension_numbers<[1], [0], [0], [1], [0, 0, 1, 1], [], []>} : vector<2x64xf32>, vector<64x256xf32>, vector<2x256xf32> -> vector<2x256xf32>
    %217 = arith.addf %215, %216 : vector<2x256xf32>
    %218 = vector.extract_strided_slice %217 {offsets = [0, 0], sizes = [2, 192], strides = [1, 1]} : vector<2x256xf32> to vector<2x192xf32>
    %219 = arith.negf %218 : vector<2x192xf32>
    %220 = math.exp %219 : vector<2x192xf32>
    %cst_114 = arith.constant 1.000000e+00 : f32
    %221 = vector.broadcast %cst_114 : f32 to vector<2x192xf32>
    %222 = arith.addf %221, %220 : vector<2x192xf32>
    %223 = arith.divf %221, %222 : vector<2x192xf32>
    %224 = vector.extract_strided_slice %217 {offsets = [0, 192], sizes = [2, 64], strides = [1, 1]} : vector<2x256xf32> to vector<2x64xf32>
    %225 = math.tanh %224 : vector<2x64xf32>
    %226 = vector.extract_strided_slice %223 {offsets = [0, 0], sizes = [2, 64], strides = [1, 1]} : vector<2x192xf32> to vector<2x64xf32>
    %227 = vector.extract_strided_slice %223 {offsets = [0, 64], sizes = [2, 64], strides = [1, 1]} : vector<2x192xf32> to vector<2x64xf32>
    %228 = vector.extract_strided_slice %223 {offsets = [0, 128], sizes = [2, 64], strides = [1, 1]} : vector<2x192xf32> to vector<2x64xf32>
    %229 = arith.mulf %227, %206 : vector<2x64xf32>
    %230 = arith.mulf %226, %225 : vector<2x64xf32>
    %231 = arith.addf %229, %230 : vector<2x64xf32>
    %232 = math.tanh %231 : vector<2x64xf32>
    %233 = arith.mulf %228, %232 : vector<2x64xf32>
    %234 = arith.index_cast %c2_i32 : i32 to index
    %c0_115 = arith.constant 0 : index
    %c0_116 = arith.constant 0 : index
    %235 = vector.load %arg4[%234, %c0_115, %c0_116] : memref<8x2x64xf32, #tpu.memory_space<vmem>>, vector<1x2x64xf32>
    %236 = vector.shape_cast %235 : vector<1x2x64xf32> to vector<2x64xf32>
    %237 = vector.shape_cast %233 : vector<2x64xf32> to vector<1x2x64xf32>
    tpu.vector_store %arg4[%234, %c0_115, %c0_116], %237 {strides = array<i32>} : memref<8x2x64xf32, #tpu.memory_space<vmem>>, vector<1x2x64xf32>,
    %c3_i32 = arith.constant 3 : i32
    %238 = arith.index_cast %c3_i32 : i32 to index
    %c0_117 = arith.constant 0 : index
    %c0_118 = arith.constant 0 : index
    %239 = vector.load %arg6[%238, %c0_117, %c0_118] : memref<8x2x256xf32, #tpu.memory_space<vmem>>, vector<1x2x256xf32>
    %240 = vector.shape_cast %239 : vector<1x2x256xf32> to vector<2x256xf32>
    %cst_119 = arith.constant dense<0.000000e+00> : vector<2x256xf32>
    %241 = tpu.matmul %233, %160, %cst_119 {dimension_numbers = #tpu.dot_dimension_numbers<[1], [0], [0], [1], [0, 0, 1, 1], [], []>} : vector<2x64xf32>, vector<64x256xf32>, vector<2x256xf32> -> vector<2x256xf32>
    %242 = arith.addf %240, %241 : vector<2x256xf32>
    %243 = vector.extract_strided_slice %242 {offsets = [0, 0], sizes = [2, 192], strides = [1, 1]} : vector<2x256xf32> to vector<2x192xf32>
    %244 = arith.negf %243 : vector<2x192xf32>
    %245 = math.exp %244 : vector<2x192xf32>
    %cst_120 = arith.constant 1.000000e+00 : f32
    %246 = vector.broadcast %cst_120 : f32 to vector<2x192xf32>
    %247 = arith.addf %246, %245 : vector<2x192xf32>
    %248 = arith.divf %246, %247 : vector<2x192xf32>
    %249 = vector.extract_strided_slice %242 {offsets = [0, 192], sizes = [2, 64], strides = [1, 1]} : vector<2x256xf32> to vector<2x64xf32>
    %250 = math.tanh %249 : vector<2x64xf32>
    %251 = vector.extract_strided_slice %248 {offsets = [0, 0], sizes = [2, 64], strides = [1, 1]} : vector<2x192xf32> to vector<2x64xf32>
    %252 = vector.extract_strided_slice %248 {offsets = [0, 64], sizes = [2, 64], strides = [1, 1]} : vector<2x192xf32> to vector<2x64xf32>
    %253 = vector.extract_strided_slice %248 {offsets = [0, 128], sizes = [2, 64], strides = [1, 1]} : vector<2x192xf32> to vector<2x64xf32>
    %254 = arith.mulf %252, %231 : vector<2x64xf32>
    %255 = arith.mulf %251, %250 : vector<2x64xf32>
    %256 = arith.addf %254, %255 : vector<2x64xf32>
    %257 = math.tanh %256 : vector<2x64xf32>
    %258 = arith.mulf %253, %257 : vector<2x64xf32>
    %259 = arith.index_cast %c3_i32 : i32 to index
    %c0_121 = arith.constant 0 : index
    %c0_122 = arith.constant 0 : index
    %260 = vector.load %arg4[%259, %c0_121, %c0_122] : memref<8x2x64xf32, #tpu.memory_space<vmem>>, vector<1x2x64xf32>
    %261 = vector.shape_cast %260 : vector<1x2x64xf32> to vector<2x64xf32>
    %262 = vector.shape_cast %258 : vector<2x64xf32> to vector<1x2x64xf32>
    tpu.vector_store %arg4[%259, %c0_121, %c0_122], %262 {strides = array<i32>} : memref<8x2x64xf32, #tpu.memory_space<vmem>>, vector<1x2x64xf32>,
    %c4_i32 = arith.constant 4 : i32
    %263 = arith.index_cast %c4_i32 : i32 to index
    %c0_123 = arith.constant 0 : index
    %c0_124 = arith.constant 0 : index
    %264 = vector.load %arg6[%263, %c0_123, %c0_124] : memref<8x2x256xf32, #tpu.memory_space<vmem>>, vector<1x2x256xf32>
    %265 = vector.shape_cast %264 : vector<1x2x256xf32> to vector<2x256xf32>
    %cst_125 = arith.constant dense<0.000000e+00> : vector<2x256xf32>
    %266 = tpu.matmul %258, %160, %cst_125 {dimension_numbers = #tpu.dot_dimension_numbers<[1], [0], [0], [1], [0, 0, 1, 1], [], []>} : vector<2x64xf32>, vector<64x256xf32>, vector<2x256xf32> -> vector<2x256xf32>
    %267 = arith.addf %265, %266 : vector<2x256xf32>
    %268 = vector.extract_strided_slice %267 {offsets = [0, 0], sizes = [2, 192], strides = [1, 1]} : vector<2x256xf32> to vector<2x192xf32>
    %269 = arith.negf %268 : vector<2x192xf32>
    %270 = math.exp %269 : vector<2x192xf32>
    %cst_126 = arith.constant 1.000000e+00 : f32
    %271 = vector.broadcast %cst_126 : f32 to vector<2x192xf32>
    %272 = arith.addf %271, %270 : vector<2x192xf32>
    %273 = arith.divf %271, %272 : vector<2x192xf32>
    %274 = vector.extract_strided_slice %267 {offsets = [0, 192], sizes = [2, 64], strides = [1, 1]} : vector<2x256xf32> to vector<2x64xf32>
    %275 = math.tanh %274 : vector<2x64xf32>
    %276 = vector.extract_strided_slice %273 {offsets = [0, 0], sizes = [2, 64], strides = [1, 1]} : vector<2x192xf32> to vector<2x64xf32>
    %277 = vector.extract_strided_slice %273 {offsets = [0, 64], sizes = [2, 64], strides = [1, 1]} : vector<2x192xf32> to vector<2x64xf32>
    %278 = vector.extract_strided_slice %273 {offsets = [0, 128], sizes = [2, 64], strides = [1, 1]} : vector<2x192xf32> to vector<2x64xf32>
    %279 = arith.mulf %277, %256 : vector<2x64xf32>
    %280 = arith.mulf %276, %275 : vector<2x64xf32>
    %281 = arith.addf %279, %280 : vector<2x64xf32>
    %282 = math.tanh %281 : vector<2x64xf32>
    %283 = arith.mulf %278, %282 : vector<2x64xf32>
    %284 = arith.index_cast %c4_i32 : i32 to index
    %c0_127 = arith.constant 0 : index
    %c0_128 = arith.constant 0 : index
    %285 = vector.load %arg4[%284, %c0_127, %c0_128] : memref<8x2x64xf32, #tpu.memory_space<vmem>>, vector<1x2x64xf32>
    %286 = vector.shape_cast %285 : vector<1x2x64xf32> to vector<2x64xf32>
    %287 = vector.shape_cast %283 : vector<2x64xf32> to vector<1x2x64xf32>
    tpu.vector_store %arg4[%284, %c0_127, %c0_128], %287 {strides = array<i32>} : memref<8x2x64xf32, #tpu.memory_space<vmem>>, vector<1x2x64xf32>,
    %c5_i32 = arith.constant 5 : i32
    %288 = arith.index_cast %c5_i32 : i32 to index
    %c0_129 = arith.constant 0 : index
    %c0_130 = arith.constant 0 : index
    %289 = vector.load %arg6[%288, %c0_129, %c0_130] : memref<8x2x256xf32, #tpu.memory_space<vmem>>, vector<1x2x256xf32>
    %290 = vector.shape_cast %289 : vector<1x2x256xf32> to vector<2x256xf32>
    %cst_131 = arith.constant dense<0.000000e+00> : vector<2x256xf32>
    %291 = tpu.matmul %283, %160, %cst_131 {dimension_numbers = #tpu.dot_dimension_numbers<[1], [0], [0], [1], [0, 0, 1, 1], [], []>} : vector<2x64xf32>, vector<64x256xf32>, vector<2x256xf32> -> vector<2x256xf32>
    %292 = arith.addf %290, %291 : vector<2x256xf32>
    %293 = vector.extract_strided_slice %292 {offsets = [0, 0], sizes = [2, 192], strides = [1, 1]} : vector<2x256xf32> to vector<2x192xf32>
    %294 = arith.negf %293 : vector<2x192xf32>
    %295 = math.exp %294 : vector<2x192xf32>
    %cst_132 = arith.constant 1.000000e+00 : f32
    %296 = vector.broadcast %cst_132 : f32 to vector<2x192xf32>
    %297 = arith.addf %296, %295 : vector<2x192xf32>
    %298 = arith.divf %296, %297 : vector<2x192xf32>
    %299 = vector.extract_strided_slice %292 {offsets = [0, 192], sizes = [2, 64], strides = [1, 1]} : vector<2x256xf32> to vector<2x64xf32>
    %300 = math.tanh %299 : vector<2x64xf32>
    %301 = vector.extract_strided_slice %298 {offsets = [0, 0], sizes = [2, 64], strides = [1, 1]} : vector<2x192xf32> to vector<2x64xf32>
    %302 = vector.extract_strided_slice %298 {offsets = [0, 64], sizes = [2, 64], strides = [1, 1]} : vector<2x192xf32> to vector<2x64xf32>
    %303 = vector.extract_strided_slice %298 {offsets = [0, 128], sizes = [2, 64], strides = [1, 1]} : vector<2x192xf32> to vector<2x64xf32>
    %304 = arith.mulf %302, %281 : vector<2x64xf32>
    %305 = arith.mulf %301, %300 : vector<2x64xf32>
    %306 = arith.addf %304, %305 : vector<2x64xf32>
    %307 = math.tanh %306 : vector<2x64xf32>
    %308 = arith.mulf %303, %307 : vector<2x64xf32>
    %309 = arith.index_cast %c5_i32 : i32 to index
    %c0_133 = arith.constant 0 : index
    %c0_134 = arith.constant 0 : index
    %310 = vector.load %arg4[%309, %c0_133, %c0_134] : memref<8x2x64xf32, #tpu.memory_space<vmem>>, vector<1x2x64xf32>
    %311 = vector.shape_cast %310 : vector<1x2x64xf32> to vector<2x64xf32>
    %312 = vector.shape_cast %308 : vector<2x64xf32> to vector<1x2x64xf32>
    tpu.vector_store %arg4[%309, %c0_133, %c0_134], %312 {strides = array<i32>} : memref<8x2x64xf32, #tpu.memory_space<vmem>>, vector<1x2x64xf32>,
    %c6_i32 = arith.constant 6 : i32
    %313 = arith.index_cast %c6_i32 : i32 to index
    %c0_135 = arith.constant 0 : index
    %c0_136 = arith.constant 0 : index
    %314 = vector.load %arg6[%313, %c0_135, %c0_136] : memref<8x2x256xf32, #tpu.memory_space<vmem>>, vector<1x2x256xf32>
    %315 = vector.shape_cast %314 : vector<1x2x256xf32> to vector<2x256xf32>
    %cst_137 = arith.constant dense<0.000000e+00> : vector<2x256xf32>
    %316 = tpu.matmul %308, %160, %cst_137 {dimension_numbers = #tpu.dot_dimension_numbers<[1], [0], [0], [1], [0, 0, 1, 1], [], []>} : vector<2x64xf32>, vector<64x256xf32>, vector<2x256xf32> -> vector<2x256xf32>
    %317 = arith.addf %315, %316 : vector<2x256xf32>
    %318 = vector.extract_strided_slice %317 {offsets = [0, 0], sizes = [2, 192], strides = [1, 1]} : vector<2x256xf32> to vector<2x192xf32>
    %319 = arith.negf %318 : vector<2x192xf32>
    %320 = math.exp %319 : vector<2x192xf32>
    %cst_138 = arith.constant 1.000000e+00 : f32
    %321 = vector.broadcast %cst_138 : f32 to vector<2x192xf32>
    %322 = arith.addf %321, %320 : vector<2x192xf32>
    %323 = arith.divf %321, %322 : vector<2x192xf32>
    %324 = vector.extract_strided_slice %317 {offsets = [0, 192], sizes = [2, 64], strides = [1, 1]} : vector<2x256xf32> to vector<2x64xf32>
    %325 = math.tanh %324 : vector<2x64xf32>
    %326 = vector.extract_strided_slice %323 {offsets = [0, 0], sizes = [2, 64], strides = [1, 1]} : vector<2x192xf32> to vector<2x64xf32>
    %327 = vector.extract_strided_slice %323 {offsets = [0, 64], sizes = [2, 64], strides = [1, 1]} : vector<2x192xf32> to vector<2x64xf32>
    %328 = vector.extract_strided_slice %323 {offsets = [0, 128], sizes = [2, 64], strides = [1, 1]} : vector<2x192xf32> to vector<2x64xf32>
    %329 = arith.mulf %327, %306 : vector<2x64xf32>
    %330 = arith.mulf %326, %325 : vector<2x64xf32>
    %331 = arith.addf %329, %330 : vector<2x64xf32>
    %332 = math.tanh %331 : vector<2x64xf32>
    %333 = arith.mulf %328, %332 : vector<2x64xf32>
    %334 = arith.index_cast %c6_i32 : i32 to index
    %c0_139 = arith.constant 0 : index
    %c0_140 = arith.constant 0 : index
    %335 = vector.load %arg4[%334, %c0_139, %c0_140] : memref<8x2x64xf32, #tpu.memory_space<vmem>>, vector<1x2x64xf32>
    %336 = vector.shape_cast %335 : vector<1x2x64xf32> to vector<2x64xf32>
    %337 = vector.shape_cast %333 : vector<2x64xf32> to vector<1x2x64xf32>
    tpu.vector_store %arg4[%334, %c0_139, %c0_140], %337 {strides = array<i32>} : memref<8x2x64xf32, #tpu.memory_space<vmem>>, vector<1x2x64xf32>,
    %c7_i32 = arith.constant 7 : i32
    %338 = arith.index_cast %c7_i32 : i32 to index
    %c0_141 = arith.constant 0 : index
    %c0_142 = arith.constant 0 : index
    %339 = vector.load %arg6[%338, %c0_141, %c0_142] : memref<8x2x256xf32, #tpu.memory_space<vmem>>, vector<1x2x256xf32>
    %340 = vector.shape_cast %339 : vector<1x2x256xf32> to vector<2x256xf32>
    %cst_143 = arith.constant dense<0.000000e+00> : vector<2x256xf32>
    %341 = tpu.matmul %333, %160, %cst_143 {dimension_numbers = #tpu.dot_dimension_numbers<[1], [0], [0], [1], [0, 0, 1, 1], [], []>} : vector<2x64xf32>, vector<64x256xf32>, vector<2x256xf32> -> vector<2x256xf32>
    %342 = arith.addf %340, %341 : vector<2x256xf32>
    %343 = vector.extract_strided_slice %342 {offsets = [0, 0], sizes = [2, 192], strides = [1, 1]} : vector<2x256xf32> to vector<2x192xf32>
    %344 = arith.negf %343 : vector<2x192xf32>
    %345 = math.exp %344 : vector<2x192xf32>
    %cst_144 = arith.constant 1.000000e+00 : f32
    %346 = vector.broadcast %cst_144 : f32 to vector<2x192xf32>
    %347 = arith.addf %346, %345 : vector<2x192xf32>
    %348 = arith.divf %346, %347 : vector<2x192xf32>
    %349 = vector.extract_strided_slice %342 {offsets = [0, 192], sizes = [2, 64], strides = [1, 1]} : vector<2x256xf32> to vector<2x64xf32>
    %350 = math.tanh %349 : vector<2x64xf32>
    %351 = vector.extract_strided_slice %348 {offsets = [0, 0], sizes = [2, 64], strides = [1, 1]} : vector<2x192xf32> to vector<2x64xf32>
    %352 = vector.extract_strided_slice %348 {offsets = [0, 64], sizes = [2, 64], strides = [1, 1]} : vector<2x192xf32> to vector<2x64xf32>
    %353 = vector.extract_strided_slice %348 {offsets = [0, 128], sizes = [2, 64], strides = [1, 1]} : vector<2x192xf32> to vector<2x64xf32>
    %354 = arith.mulf %352, %331 : vector<2x64xf32>
    %355 = arith.mulf %351, %350 : vector<2x64xf32>
    %356 = arith.addf %354, %355 : vector<2x64xf32>
    %357 = math.tanh %356 : vector<2x64xf32>
    %358 = arith.mulf %353, %357 : vector<2x64xf32>
    %359 = arith.index_cast %c7_i32 : i32 to index
    %c0_145 = arith.constant 0 : index
    %c0_146 = arith.constant 0 : index
    %360 = vector.load %arg4[%359, %c0_145, %c0_146] : memref<8x2x64xf32, #tpu.memory_space<vmem>>, vector<1x2x64xf32>
    %361 = vector.shape_cast %360 : vector<1x2x64xf32> to vector<2x64xf32>
    %362 = vector.shape_cast %358 : vector<2x64xf32> to vector<1x2x64xf32>
    tpu.vector_store %arg4[%359, %c0_145, %c0_146], %362 {strides = array<i32>} : memref<8x2x64xf32, #tpu.memory_space<vmem>>, vector<1x2x64xf32>,
    %c8_i32 = arith.constant 8 : i32
    %c0_147 = arith.constant 0 : index
    %c0_148 = arith.constant 0 : index
    %363 = vector.load %arg5[%c0_147, %c0_148] : memref<2x64xf32, #tpu.memory_space<vmem>>, vector<2x64xf32>
    tpu.vector_store %arg5[%c0_147, %c0_148], %358 {strides = array<i32>} : memref<2x64xf32, #tpu.memory_space<vmem>>, vector<2x64xf32>,
    %364 = tpu.iota {dimensions = array<i32: 1>} : vector<2x64xi32>
    %c32_i32 = arith.constant 32 : i32
    %365 = vector.broadcast %c32_i32 : i32 to vector<2x64xi32>
    %366 = arith.cmpi slt, %364, %365 : vector<2x64xi32>
    %c0_149 = arith.constant 0 : index
    %c0_150 = arith.constant 0 : index
    %c0_151 = arith.constant 0 : index
    %367 = vector.load %arg4[%c0_149, %c0_150, %c0_151] : memref<8x2x64xf32, #tpu.memory_space<vmem>>, vector<1x2x64xf32>
    %368 = vector.shape_cast %367 : vector<1x2x64xf32> to vector<2x64xf32>
    %c7_152 = arith.constant 7 : index
    %c0_153 = arith.constant 0 : index
    %c0_154 = arith.constant 0 : index
    %369 = vector.load %arg4[%c7_152, %c0_153, %c0_154] : memref<8x2x64xf32, #tpu.memory_space<vmem>>, vector<1x2x64xf32>
    %370 = vector.shape_cast %369 : vector<1x2x64xf32> to vector<2x64xf32>
    %371 = arith.select %366, %368, %370 : vector<2x64xi1>, vector<2x64xf32>
    %c0_155 = arith.constant 0 : index
    %c0_156 = arith.constant 0 : index
    %c0_157 = arith.constant 0 : index
    %372 = vector.load %arg4[%c0_155, %c0_156, %c0_157] : memref<8x2x64xf32, #tpu.memory_space<vmem>>, vector<1x2x64xf32>
    %373 = vector.shape_cast %372 : vector<1x2x64xf32> to vector<2x64xf32>
    %374 = vector.shape_cast %371 : vector<2x64xf32> to vector<1x2x64xf32>
    tpu.vector_store %arg4[%c0_155, %c0_156, %c0_157], %374 {strides = array<i32>} : memref<8x2x64xf32, #tpu.memory_space<vmem>>, vector<1x2x64xf32>,
    %375 = arith.select %366, %370, %368 : vector<2x64xi1>, vector<2x64xf32>
    %c7_158 = arith.constant 7 : index
    %c0_159 = arith.constant 0 : index
    %c0_160 = arith.constant 0 : index
    %376 = vector.load %arg4[%c7_158, %c0_159, %c0_160] : memref<8x2x64xf32, #tpu.memory_space<vmem>>, vector<1x2x64xf32>
    %377 = vector.shape_cast %376 : vector<1x2x64xf32> to vector<2x64xf32>
    %378 = vector.shape_cast %375 : vector<2x64xf32> to vector<1x2x64xf32>
    tpu.vector_store %arg4[%c7_158, %c0_159, %c0_160], %378 {strides = array<i32>} : memref<8x2x64xf32, #tpu.memory_space<vmem>>, vector<1x2x64xf32>,
    %c1_161 = arith.constant 1 : index
    %c0_162 = arith.constant 0 : index
    %c0_163 = arith.constant 0 : index
    %379 = vector.load %arg4[%c1_161, %c0_162, %c0_163] : memref<8x2x64xf32, #tpu.memory_space<vmem>>, vector<1x2x64xf32>
    %380 = vector.shape_cast %379 : vector<1x2x64xf32> to vector<2x64xf32>
    %c6_164 = arith.constant 6 : index
    %c0_165 = arith.constant 0 : index
    %c0_166 = arith.constant 0 : index
    %381 = vector.load %arg4[%c6_164, %c0_165, %c0_166] : memref<8x2x64xf32, #tpu.memory_space<vmem>>, vector<1x2x64xf32>
    %382 = vector.shape_cast %381 : vector<1x2x64xf32> to vector<2x64xf32>
    %383 = arith.select %366, %380, %382 : vector<2x64xi1>, vector<2x64xf32>
    %c1_167 = arith.constant 1 : index
    %c0_168 = arith.constant 0 : index
    %c0_169 = arith.constant 0 : index
    %384 = vector.load %arg4[%c1_167, %c0_168, %c0_169] : memref<8x2x64xf32, #tpu.memory_space<vmem>>, vector<1x2x64xf32>
    %385 = vector.shape_cast %384 : vector<1x2x64xf32> to vector<2x64xf32>
    %386 = vector.shape_cast %383 : vector<2x64xf32> to vector<1x2x64xf32>
    tpu.vector_store %arg4[%c1_167, %c0_168, %c0_169], %386 {strides = array<i32>} : memref<8x2x64xf32, #tpu.memory_space<vmem>>, vector<1x2x64xf32>,
    %387 = arith.select %366, %382, %380 : vector<2x64xi1>, vector<2x64xf32>
    %c6_170 = arith.constant 6 : index
    %c0_171 = arith.constant 0 : index
    %c0_172 = arith.constant 0 : index
    %388 = vector.load %arg4[%c6_170, %c0_171, %c0_172] : memref<8x2x64xf32, #tpu.memory_space<vmem>>, vector<1x2x64xf32>
    %389 = vector.shape_cast %388 : vector<1x2x64xf32> to vector<2x64xf32>
    %390 = vector.shape_cast %387 : vector<2x64xf32> to vector<1x2x64xf32>
    tpu.vector_store %arg4[%c6_170, %c0_171, %c0_172], %390 {strides = array<i32>} : memref<8x2x64xf32, #tpu.memory_space<vmem>>, vector<1x2x64xf32>,
    %c2_173 = arith.constant 2 : index
    %c0_174 = arith.constant 0 : index
    %c0_175 = arith.constant 0 : index
    %391 = vector.load %arg4[%c2_173, %c0_174, %c0_175] : memref<8x2x64xf32, #tpu.memory_space<vmem>>, vector<1x2x64xf32>
    %392 = vector.shape_cast %391 : vector<1x2x64xf32> to vector<2x64xf32>
    %c5_176 = arith.constant 5 : index
    %c0_177 = arith.constant 0 : index
    %c0_178 = arith.constant 0 : index
    %393 = vector.load %arg4[%c5_176, %c0_177, %c0_178] : memref<8x2x64xf32, #tpu.memory_space<vmem>>, vector<1x2x64xf32>
    %394 = vector.shape_cast %393 : vector<1x2x64xf32> to vector<2x64xf32>
    %395 = arith.select %366, %392, %394 : vector<2x64xi1>, vector<2x64xf32>
    %c2_179 = arith.constant 2 : index
    %c0_180 = arith.constant 0 : index
    %c0_181 = arith.constant 0 : index
    %396 = vector.load %arg4[%c2_179, %c0_180, %c0_181] : memref<8x2x64xf32, #tpu.memory_space<vmem>>, vector<1x2x64xf32>
    %397 = vector.shape_cast %396 : vector<1x2x64xf32> to vector<2x64xf32>
    %398 = vector.shape_cast %395 : vector<2x64xf32> to vector<1x2x64xf32>
    tpu.vector_store %arg4[%c2_179, %c0_180, %c0_181], %398 {strides = array<i32>} : memref<8x2x64xf32, #tpu.memory_space<vmem>>, vector<1x2x64xf32>,
    %399 = arith.select %366, %394, %392 : vector<2x64xi1>, vector<2x64xf32>
    %c5_182 = arith.constant 5 : index
    %c0_183 = arith.constant 0 : index
    %c0_184 = arith.constant 0 : index
    %400 = vector.load %arg4[%c5_182, %c0_183, %c0_184] : memref<8x2x64xf32, #tpu.memory_space<vmem>>, vector<1x2x64xf32>
    %401 = vector.shape_cast %400 : vector<1x2x64xf32> to vector<2x64xf32>
    %402 = vector.shape_cast %399 : vector<2x64xf32> to vector<1x2x64xf32>
    tpu.vector_store %arg4[%c5_182, %c0_183, %c0_184], %402 {strides = array<i32>} : memref<8x2x64xf32, #tpu.memory_space<vmem>>, vector<1x2x64xf32>,
    %c3_185 = arith.constant 3 : index
    %c0_186 = arith.constant 0 : index
    %c0_187 = arith.constant 0 : index
    %403 = vector.load %arg4[%c3_185, %c0_186, %c0_187] : memref<8x2x64xf32, #tpu.memory_space<vmem>>, vector<1x2x64xf32>
    %404 = vector.shape_cast %403 : vector<1x2x64xf32> to vector<2x64xf32>
    %c4_188 = arith.constant 4 : index
    %c0_189 = arith.constant 0 : index
    %c0_190 = arith.constant 0 : index
    %405 = vector.load %arg4[%c4_188, %c0_189, %c0_190] : memref<8x2x64xf32, #tpu.memory_space<vmem>>, vector<1x2x64xf32>
    %406 = vector.shape_cast %405 : vector<1x2x64xf32> to vector<2x64xf32>
    %407 = arith.select %366, %404, %406 : vector<2x64xi1>, vector<2x64xf32>
    %c3_191 = arith.constant 3 : index
    %c0_192 = arith.constant 0 : index
    %c0_193 = arith.constant 0 : index
    %408 = vector.load %arg4[%c3_191, %c0_192, %c0_193] : memref<8x2x64xf32, #tpu.memory_space<vmem>>, vector<1x2x64xf32>
    %409 = vector.shape_cast %408 : vector<1x2x64xf32> to vector<2x64xf32>
    %410 = vector.shape_cast %407 : vector<2x64xf32> to vector<1x2x64xf32>
    tpu.vector_store %arg4[%c3_191, %c0_192, %c0_193], %410 {strides = array<i32>} : memref<8x2x64xf32, #tpu.memory_space<vmem>>, vector<1x2x64xf32>,
    %411 = arith.select %366, %406, %404 : vector<2x64xi1>, vector<2x64xf32>
    %c4_194 = arith.constant 4 : index
    %c0_195 = arith.constant 0 : index
    %c0_196 = arith.constant 0 : index
    %412 = vector.load %arg4[%c4_194, %c0_195, %c0_196] : memref<8x2x64xf32, #tpu.memory_space<vmem>>, vector<1x2x64xf32>
    %413 = vector.shape_cast %412 : vector<1x2x64xf32> to vector<2x64xf32>
    %414 = vector.shape_cast %411 : vector<2x64xf32> to vector<1x2x64xf32>
    tpu.vector_store %arg4[%c4_194, %c0_195, %c0_196], %414 {strides = array<i32>} : memref<8x2x64xf32, #tpu.memory_space<vmem>>, vector<1x2x64xf32>,
    return
  }
}

</mosaic_0001>

<bundles_post_ra>
// kernel: text_encoder_forward.1
= control target key start
LH: loop header
LB: loop body
LE: loop exit
PB: predicated region body
PF: predicated region fallthrough
CT: control target
= control target key end

     0   :  { %s2444_s0 = inlined_call_operand.vmem [shape: s32[16], index: 0, kind: input, shape index: {}]   ;;  %s2445_s1 = inlined_call_operand.hbm [shape: f32[50,256], index: 1, kind: input, shape index: {}]   ;;  %s2446_s2 = inlined_call_operand.hbm [shape: f32[50,256], index: 2, kind: input, shape index: {}]   ;;  %s2447_s3 = inlined_call_operand.hbm [shape: f32[64,256], index: 3, kind: input, shape index: {}]   ;;  %s2448_s4 = inlined_call_operand.hbm [shape: f32[8,2,64], index: 4, kind: output, shape index: {0}]   ;;  %s2449_s5 = inlined_call_operand.hbm [shape: f32[2,64], index: 5, kind: output, shape index: {1}]  }
   0x1   :  { %2454 = sst [smem:[#allocation19_spill]] %s2448_s4 }
   0x2   :  { %2455 = sst [smem:[#allocation20_spill]] %s2449_s5 }
   0x3   :  { %11 = vsyncpa [#allocation6], 0 }
   0x4   :  { %12 = vsyncpa [#allocation4], 0 }
   0x5   :  { %13 = vsyncpa [#allocation9], 0 }
   0x6   :  { %14 = vsyncpa [#allocation5], 0 }
   0x7   :  { %15 = vsyncpa [#allocation13], 0  ;;  %s22_s20 = sshll.u32 %s2444_s0, 4  ;;  %s2041_s21 = smov [#allocation8]   ;;  %s23_s20 = int_to_ptr.vmem [resolvable:$true] %s22_s20 }
   0x8   :  { %s43_s22 = sshll.u32 %s2041_s21, 4  ;;  %s1909_s25 = scalar_lea.hbm %s2446_s2, 1792  ;;  %s44_s22 = int_to_ptr.vmem [resolvable:$true] %s43_s22 }
   0x9   :  { %p1910_p0 = scmp.ne.s32.totalorder %s2446_s2, %s1909_s25  ;;  %p1913_p1 = scmp.lt.u32.totalorder %s1909_s25, %s2446_s2 }
   0xb   :  { %p1915_p2 = pnand %p1913_p1, %p1910_p0 }
   0xd   :  { %1918 = shalt.err (!%p1915_p2)
}
   0xe   :  { %s1919_s30 = scalar_lea.vmem %s44_s22, 1792  ;;  %p1924_p4 = scmp.lt.s32.totalorder %s44_s22, %s44_s22 }
   0xf   :  { %p1920_p3 = scmp.ne.s32.totalorder %s44_s22, %s1919_s30  ;;  %p1925_p5 = scmp.lt.s32.totalorder %s1919_s30, %s1919_s30 }
  0x11   :  { %p1926_p6 = por %p1925_p5, %p1924_p4 }
  0x13   :  { %p1927_p7 = pnand %p1926_p6, %p1920_p3 }
  0x15   :  { %1930 = shalt.err (!%p1927_p7)
}
  0x16   :  { %s2042_s0 = smov 256   ;;  %s2043_s6 = smov 16  }
  0x17   :  { %49 = dma.hbm_to_vmem [thread:$0]  %s2446_s2, 1792, %s44_s22, [#allocation9], %s2042_s0, %s2042_s0, %s2043_s6  }
  0x18   :  { %s1931_s9 = scalar_lea.vmem %s23_s20, 16  ;;  %p1936_p9 = scmp.lt.s32.totalorder %s23_s20, %s23_s20 }
  0x19   :  { %p1932_p8 = scmp.ne.s32.totalorder %s23_s20, %s1931_s9  ;;  %p1937_p10 = scmp.lt.s32.totalorder %s1931_s9, %s1931_s9 }
  0x1b   :  { %p1938_p11 = por %p1937_p10, %p1936_p9 }
  0x1d   :  { %p1939_p12 = pnand %p1938_p11, %p1932_p8 }
  0x1f   :  { %1942 = shalt.err (!%p1939_p12)
}
  0x20   :  { %s2044_s10 = smov [#allocation3]   ;;  %s2045_s11 = smov [#allocation7]  }
  0x21   :  { %25 = dma.vmem_to_smem %s23_s20, 16, %s2044_s10, [#allocation6]  }
  0x22   :  { %s31_s12 = sshll.u32 %s2045_s11, 4  ;;  %s2046_s13 = smov [#allocation10]   ;;  %s32_s12 = int_to_ptr.vmem [resolvable:$true] %s31_s12 }
  0x23   :  { %s55_s14 = sshll.u32 %s2046_s13, 4  ;;  %s1943_s2 = scalar_lea.hbm %s2445_s1, 1792  ;;  %s2102_s14 = int_to_ptr.vmem [resolvable:$true] %s55_s14 }
  0x24   :  { %p1944_p13 = scmp.ne.s32.totalorder %s2445_s1, %s1943_s2  ;;  %p1947_p0 = scmp.lt.u32.totalorder %s1943_s2, %s2445_s1 }
  0x26   :  { %p1949_p1 = pnand %p1947_p0, %p1944_p13 }
  0x28   :  { %1952 = shalt.err (!%p1949_p1)
}
  0x29   :  { %s1953_s20 = scalar_lea.vmem %s32_s12, 1792  ;;  %p1958_p3 = scmp.lt.s32.totalorder %s32_s12, %s32_s12 }
  0x2a   :  { %p1954_p2 = scmp.ne.s32.totalorder %s32_s12, %s1953_s20  ;;  %p1959_p4 = scmp.lt.s32.totalorder %s1953_s20, %s1953_s20 }
  0x2c   :  { %p1960_p5 = por %p1959_p4, %p1958_p3 }
  0x2e   :  { %p1961_p6 = pnand %p1960_p5, %p1954_p2 }
  0x30   :  { %1964 = shalt.err (!%p1961_p6)
}
  0x31   :  { %37 = dma.hbm_to_vmem [thread:$0]  %s2445_s1, 1792, %s32_s12, [#allocation4], %s2042_s0, %s2042_s0, %s2043_s6  }
  0x32   :  { %s1965_s26 = scalar_lea.hbm %s2447_s3, 2048 }
  0x33   :  { %p1966_p7 = scmp.ne.s32.totalorder %s2447_s3, %s1965_s26  ;;  %p1969_p8 = scmp.lt.u32.totalorder %s1965_s26, %s2447_s3 }
  0x35   :  { %p1971_p9 = pnand %p1969_p8, %p1966_p7 }
  0x37   :  { %1974 = shalt.err (!%p1971_p9)
}
  0x38   :  { %s1975_s7 = scalar_lea.vmem %s2102_s14, 2048  ;;  %p1980_p11 = scmp.lt.s32.totalorder %s2102_s14, %s2102_s14 }
  0x39   :  { %p1976_p10 = scmp.ne.s32.totalorder %s2102_s14, %s1975_s7  ;;  %p1981_p12 = scmp.lt.s32.totalorder %s1975_s7, %s1975_s7 }
  0x3b   :  { %p1982_p13 = por %p1981_p12, %p1980_p11 }
  0x3d   :  { %p1983_p0 = pnand %p1982_p13, %p1976_p10 }
  0x3f   :  { %1986 = shalt.err (!%p1983_p0)
}
  0x40   :  { %61 = dma.hbm_to_vmem [thread:$0]  %s2447_s3, 2048, %s2102_s14, [#allocation9], %s2042_s0, %s2042_s0, %s2043_s6  }
  0x41   :  { %2031 = dma.done.wait [#allocation6], 16  }
  0x42   :  { %2032 = vsyncadd [#allocation6], 4294967280 }
  0x43   :  { %2033 = dma.done.wait [#allocation4], 1792  }
  0x44   :  { %2034 = vsyncadd [#allocation4], 4294965504 }
  0x45   :  { %2035 = dma.done.wait [#allocation9], 3840  }
  0x46   :  { %2036 = vsyncadd [#allocation9], 4294963456 }
  0x47   :  { %74 = sfence }
  0x48   :  { %v447_v0 = vld [vmem:[#allocation10 + $0x8] sm:$0xff]  ;;  %v449_v1 = vld [vmem:[#allocation10 + $0x18] sm:$0xff]  ;;  %v446_v2 = vld [vmem:[#allocation10] sm:$0xff]  ;;  %v2047_v7 = vmov 0.0   ;;  %s75_s3 = sld [smem:[#allocation3]]  ;;  %s1563_s0 = sld [smem:[#allocation3 + $0x7]]  ;;  %v96_v25 = vlaneseq }
  0x49   :  { %v2139_v3 = vpack.c.bf16 %v449_v1, %v447_v0  ;;  %v448_v4 = vld [vmem:[#allocation10 + $0x10] sm:$0xff]  ;;  %v451_v5 = vld [vmem:[#allocation10 + $0x28] sm:$0xff]  ;;  %v453_v6 = vld [vmem:[#allocation10 + $0x38] sm:$0xff]  ;;  %531 = vmatprep.mubr.f32.mxu0 %v2047_v7  ;;  %648 = vmatprep.mubr.f32.mxu1 %v2047_v7  ;;  %s1568_s6 = sld [smem:[#allocation3 + $0x8]]  ;;  %s1569_s9 = sld [smem:[#allocation3 + $0xf]]  ;;  %vm578_vm1 = vcmask 517120  }
  0x4a   :  { %v2143_v8 = vpack.c.bf16 %v448_v4, %v446_v2  ;;  %v2145_v9 = vpack.c.bf16 %v453_v6, %v451_v5  ;;  %v450_v10 = vld [vmem:[#allocation10 + $0x20] sm:$0xff]  ;;  %v452_v11 = vld [vmem:[#allocation10 + $0x30] sm:$0xff]  ;;  %v455_v12 = vld [vmem:[#allocation10 + $0x48] sm:$0xff]  ;;  %vm2191_vm0 = vcmp.lt.s32.totalorder %v96_v25, 256  ;;  %v2048_v33 = vmov 1983009808  }
  0x4b   :  { %1705 = vmatprep.subr.bf16.mxu0 %v2139_v3  ;;  %v457_v13 = vld [vmem:[#allocation10 + $0x58] sm:$0xff]  ;;  %1721 = vmatprep.subr.bf16.mxu1 %v2139_v3  ;;  %v2150_v14 = vpack.c.bf16 %v452_v11, %v450_v10  ;;  %v454_v16 = vld [vmem:[#allocation10 + $0x40] sm:$0xff]  ;;  %v456_v17 = vld [vmem:[#allocation10 + $0x50] sm:$0xff]  ;;  %v542_v34 = vunpack.c.l.s4 %v2048_v33  ;;  %v545_v36 = vshrl.u32 %v96_v25, 7  ;;  %s2450_s29 = smov 64   ;;  %vm463_vm2 = vcmask 523264  }
  0x4c   :  { %1707 = vmatpush1.bf16.msra.mxu0 %v2143_v8  ;;  %1723 = vmatpush1.bf16.msra.mxu1 %v2143_v8  ;;  %v2154_v15 = vpack.c.bf16 %v457_v13, %v455_v12  ;;  %v459_v18 = vld [vmem:[#allocation10 + $0x68] sm:$0xff]  ;;  %v461_v19 = vld [vmem:[#allocation10 + $0x78] sm:$0xff]  ;;  %v2158_v20 = vpack.c.bf16 %v456_v17, %v454_v16  ;;  %v458_v22 = vld [vmem:[#allocation10 + $0x60] sm:$0xff]  ;;  %s1574_s30 = sld [smem:[#allocation3 + $0x1]]  ;;  %s1575_s7 = sld [smem:[#allocation3 + $0x6]] }
  0x4d   :  { %1709 = vmatprep.subr.bf16.mxu0 %v2145_v9  ;;  %1725 = vmatprep.subr.bf16.mxu1 %v2145_v9  ;;  %v2162_v21 = vpack.c.bf16 %v461_v19, %v459_v18  ;;  %v460_v23 = vld [vmem:[#allocation10 + $0x70] sm:$0xff]  ;;  %v543_v35 = vunpack.c.0.s8 %v542_v34  ;;  %s1580_s1 = sld [smem:[#allocation3 + $0x9]]  ;;  %s1581_s8 = sld [smem:[#allocation3 + $0xe]] }
  0x4e   :  { %v2166_v24 = vpack.c.bf16 %v460_v23, %v458_v22  ;;  %s77_s10 = sshra.s32 %s75_s3, 3  ;;  %s86_s11 = sshra.s32 %s1563_s0, 3 }
  0x4f   :  { %s80_s12 = sand.u32 7, %s75_s3  ;;  %s1672_s13 = sshll.u32 %s77_s10, 4  ;;  %v2207_v38 = vsub.s32 %v543_v35, %v545_v36 }
  0x50   :  { %1711 = vmatpush1.bf16.msra.mxu0 %v2150_v14  ;;  %1727 = vmatpush1.bf16.msra.mxu1 %v2150_v14  ;;  %s2185_s14 = sadd.s32 %s1672_s13, %s80_s12  ;;  %s89_s15 = sand.u32 7, %s1563_s0 }
  0x51   :  { %1713 = vmatprep.subr.bf16.mxu0 %v2154_v15  ;;  %1729 = vmatprep.subr.bf16.mxu1 %v2154_v15  ;;  %s1673_s16 = sshll.u32 %s86_s11, 4  ;;  %s84_s2 = scalar_lea.vmem [#allocation7], %s2185_s14 }
  0x52   :  { %v85_v26 = vld [vmem:[%s84_s2] ss:$8 sm:$0x3]  ;;  %s2188_s17 = sadd.s32 %s1673_s16, %s89_s15  ;;  %s103_s18 = sshra.s32 %s1568_s6, 3 }
  0x53   :  { %s106_s19 = sand.u32 7, %s1568_s6  ;;  %s93_s21 = scalar_lea.vmem [#allocation8], %s2188_s17 }
  0x54   :  { %1715 = vmatpush1.bf16.msra.mxu0 %v2158_v20  ;;  %1731 = vmatpush1.bf16.msra.mxu1 %v2158_v20  ;;  %v94_v28 = vld [vmem:[%s93_s21] ss:$8 sm:$0x3]  ;;  %s1674_s20 = sshll.u32 %s103_s18, 4  ;;  %s112_s22 = sshra.s32 %s1569_s9, 3 }
  0x55   :  { %1717 = vmatprep.subr.bf16.mxu0 %v2162_v21  ;;  %1733 = vmatprep.subr.bf16.mxu1 %v2162_v21  ;;  %v95_v29 = vadd.f32 %v94_v28, %v85_v26  ;;  %s2196_s23 = sadd.s32 %s1674_s20, %s106_s19  ;;  %s115_s24 = sand.u32 7, %s1569_s9 }
  0x56   :  { %s1675_s25 = sshll.u32 %s112_s22, 4  ;;  %s110_s26 = scalar_lea.vmem [#allocation7], %s2196_s23 }
  0x57   :  { %100 = vst.msk [vmem:[#allocation2] ss:$2 sm:$0x3] %vm2191_vm0, %v95_v29  ;;  %v111_v30 = vld [vmem:[%s110_s26] ss:$8 sm:$0x3]  ;;  %s2201_s27 = sadd.s32 %s1675_s25, %s115_s24 }
  0x58   :  { %1719 = vmatpush1.bf16.msra.mxu0 %v2166_v24  ;;  %1735 = vmatpush1.bf16.msra.mxu1 %v2166_v24  ;;  %s119_s28 = scalar_lea.vmem [#allocation8], %s2201_s27  ;;  %s126_s3 = sshra.s32 %s1574_s30, 3 }
  0x59   :  { %1737 = vmatprep.subr.bf16.mxu0 %v2139_v3  ;;  %1753 = vmatprep.subr.bf16.mxu1 %v2139_v3  ;;  %v120_v31 = vld [vmem:[%s119_s28] ss:$8 sm:$0x3]  ;;  %s135_s0 = sshra.s32 %s1575_s7, 3  ;;  %s129_s6 = sand.u32 7, %s1574_s30 }
  0x5a   :  { %v121_v32 = vadd.f32 %v120_v31, %v111_v30  ;;  %s1676_s9 = sshll.u32 %s126_s3, 4  ;;  %s138_s11 = sand.u32 7, %s1575_s7 }
  0x5b   :  { %532 = vmatmul.mubr.f32.vlgmr.msra.gmra.mrb[0].mxu0 %v2047_v7  ;;  %s2227_s10 = sadd.s32 %s1676_s9, %s129_s6  ;;  %s1677_s12 = sshll.u32 %s135_s0, 4 }
  0x5c   :  { %1739 = vmatpush1.bf16.msra.mxu0 %v2143_v8  ;;  %765 = vmatprep.mubr.f32.mxu0 %v2047_v7  ;;  %123 = vst.msk [vmem:[#allocation2 + $0x1] ss:$2 sm:$0x3] %vm2191_vm0, %v121_v32  ;;  %s133_s13 = scalar_lea.vmem [#allocation7], %s2227_s10  ;;  %s2230_s15 = sadd.s32 %s1677_s12, %s138_s11 }
  0x5d   :  { %1741 = vmatprep.subr.bf16.mxu0 %v2145_v9  ;;  %v134_v59 = vld [vmem:[%s133_s13] ss:$8 sm:$0x3]  ;;  %s149_s16 = sshra.s32 %s1580_s1, 3  ;;  %s152_s2 = sand.u32 7, %s1580_s1 }
  0x5e   :  { %s142_s18 = scalar_lea.vmem [#allocation8], %s2230_s15  ;;  %s1678_s19 = sshll.u32 %s149_s16, 4 }
  0x5f   :  { %v143_v60 = vld [vmem:[%s142_s18] ss:$8 sm:$0x3]  ;;  %s158_s21 = sshra.s32 %s1581_s8, 3  ;;  %s2233_s20 = sadd.s32 %s1678_s19, %s152_s2 }
  0x60   :  { %1743 = vmatpush1.bf16.msra.mxu0 %v2150_v14  ;;  %v144_v61 = vadd.f32 %v143_v60, %v134_v59  ;;  %s161_s22 = sand.u32 7, %s1581_s8  ;;  %s1679_s24 = sshll.u32 %s158_s21, 4 }
  0x61   :  { %1745 = vmatprep.subr.bf16.mxu0 %v2154_v15  ;;  %s156_s25 = scalar_lea.vmem [#allocation7], %s2233_s20  ;;  %s2238_s26 = sadd.s32 %s1679_s24, %s161_s22 }
  0x62   :  { %146 = vst.msk [vmem:[#allocation2 + $0x4] ss:$2 sm:$0x3] %vm2191_vm0, %v144_v61  ;;  %v157_v62 = vld [vmem:[%s156_s25] ss:$8 sm:$0x3] }
  0x63   :  { %v462_v41 = vld [vmem:[#allocation2] sm:$0xf]  ;;  %s165_s28 = scalar_lea.vmem [#allocation8], %s2238_s26  ;;  %s1586_s30 = sld [smem:[#allocation3 + $0x2]] }
  0x64   :  { %1747 = vmatpush1.bf16.msra.mxu0 %v2158_v20  ;;  %v166_v63 = vld [vmem:[%s165_s28] ss:$8 sm:$0x3]  ;;  %s1587_s7 = sld [smem:[#allocation3 + $0x5]]  ;;  %s1592_s1 = sld [smem:[#allocation3 + $0xa]] }
  0x65   :  { %1749 = vmatprep.subr.bf16.mxu0 %v2162_v21  ;;  %v167_v0 = vadd.f32 %v166_v63, %v157_v62  ;;  %s1593_s8 = sld [smem:[#allocation3 + $0xd]] }
  0x67   :  { %169 = vst.msk [vmem:[#allocation2 + $0x5] ss:$2 sm:$0x3] %vm2191_vm0, %v167_v0 }
  0x68   :  { %1751 = vmatpush1.bf16.msra.mxu0 %v2166_v24 }
  0x69   :  { %1769 = vmatprep.subr.bf16.mxu0 %v2139_v3  ;;  %s172_s3 = sshra.s32 %s1586_s30, 3  ;;  %s175_s6 = sand.u32 7, %s1586_s30 }
  0x6a   :  { %s181_s0 = sshra.s32 %s1587_s7, 3  ;;  %s1680_s9 = sshll.u32 %s172_s3, 4 }
  0x6b   :  { %s2262_s11 = sadd.s32 %s1680_s9, %s175_s6  ;;  %s184_s12 = sand.u32 7, %s1587_s7 }
  0x6c   :  { %s1681_s13 = sshll.u32 %s181_s0, 4  ;;  %s179_s16 = scalar_lea.vmem [#allocation7], %s2262_s11 }
  0x6d   :  { %v180_v33 = vld [vmem:[%s179_s16] ss:$8 sm:$0x3]  ;;  %s2265_s2 = sadd.s32 %s1681_s13, %s184_s12  ;;  %s195_s18 = sshra.s32 %s1592_s1, 3 }
  0x6e   :  { %v580_v5 = vld [vmem:[#allocation2 + $0x4] sm:$0xf]  ;;  %s198_s19 = sand.u32 7, %s1592_s1  ;;  %s188_s21 = scalar_lea.vmem [#allocation8], %s2265_s2 }
  0x6f   :  { %v189_v34 = vld [vmem:[%s188_s21] ss:$8 sm:$0x3]  ;;  %s1682_s22 = sshll.u32 %s195_s18, 4  ;;  %s204_s24 = sshra.s32 %s1593_s8, 3 }
  0x70   :  { %v190_v35 = vadd.f32 %v189_v34, %v180_v33  ;;  %s2268_s25 = sadd.s32 %s1682_s22, %s198_s19  ;;  %s207_s28 = sand.u32 7, %s1593_s8 }
  0x71   :  { %s1683_s30 = sshll.u32 %s204_s24, 4  ;;  %s202_s7 = scalar_lea.vmem [#allocation7], %s2268_s25 }
  0x72   :  { %192 = vst.msk [vmem:[#allocation2 + $0x8] ss:$2 sm:$0x3] %vm2191_vm0, %v190_v35  ;;  %v203_v36 = vld [vmem:[%s202_s7] ss:$8 sm:$0x3]  ;;  %s2273_s3 = sadd.s32 %s1683_s30, %s207_s28 }
  0x73   :  { %s211_s0 = scalar_lea.vmem [#allocation8], %s2273_s3  ;;  %s1598_s1 = sld [smem:[#allocation3 + $0x3]] }
  0x74   :  { %s1599_s8 = sld [smem:[#allocation3 + $0x4]]  ;;  %s1604_s6 = sld [smem:[#allocation3 + $0xb]] }
  0x75   :  { %s1605_s9 = sld [smem:[#allocation3 + $0xc]] }
  0x79   :  { %s218_s12 = sshra.s32 %s1598_s1, 3  ;;  %s221_s16 = sand.u32 7, %s1598_s1 }
  0x7a   :  { %s227_s13 = sshra.s32 %s1599_s8, 3  ;;  %s1684_s18 = sshll.u32 %s218_s12, 4 }
  0x7b   :  { %s2297_s19 = sadd.s32 %s1684_s18, %s221_s16  ;;  %s230_s21 = sand.u32 7, %s1599_s8 }
  0x7c   :  { %s1685_s22 = sshll.u32 %s227_s13, 4  ;;  %s225_s24 = scalar_lea.vmem [#allocation7], %s2297_s19 }
  0x7d   :  { %v226_v61 = vld [vmem:[%s225_s24] ss:$8 sm:$0x3]  ;;  %s2300_s28 = sadd.s32 %s1685_s22, %s230_s21  ;;  %s241_s30 = sshra.s32 %s1604_s6, 3 }
  0x7e   :  { %s244_s7 = sand.u32 7, %s1604_s6  ;;  %s250_s4 = sshra.s32 %s1605_s9, 3 }
  0x7f   :  { %s253_s1 = sand.u32 7, %s1605_s9  ;;  %s1687_s12 = sshll.u32 %s250_s4, 4 }
  0x80   :  { %s2308_s13 = sadd.s32 %s1687_s12, %s253_s1  ;;  %s2458_s4 = smov 64  }
  0x81   :  { %s257_s16 = scalar_lea.vmem [#allocation8], %s2308_s13  ;;  %s280_s6 = scalar_lea.vmem [#allocation8], %s2297_s19 }
  0x82   :  { %v258_v0 = vld [vmem:[%s257_s16] ss:$8 sm:$0x3]  ;;  %s294_s9 = scalar_lea.vmem [#allocation7], %s2308_s13  ;;  %s326_s19 = scalar_lea.vmem [#allocation8], %s2262_s11 }
  0x83   :  { %v281_v35 = vld [vmem:[%s280_s6] ss:$8 sm:$0x3]  ;;  %s340_s21 = scalar_lea.vmem [#allocation7], %s2273_s3  ;;  %s349_s22 = scalar_lea.vmem [#allocation8], %s2268_s25 }
  0x84   :  { %s363_s11 = scalar_lea.vmem [#allocation7], %s2230_s15  ;;  %s386_s25 = scalar_lea.vmem [#allocation7], %s2238_s26 }
  0x85   :  { %s395_s3 = scalar_lea.vmem [#allocation8], %s2233_s20  ;;  %s418_s15 = scalar_lea.vmem [#allocation8], %s2185_s14 }
  0x86   :  { %s432_s20 = scalar_lea.vmem [#allocation7], %s2201_s27  ;;  %s441_s26 = scalar_lea.vmem [#allocation8], %s2196_s23 }
  0x87   :  { %s2050_s14 = smov [#allocation12]  }
 0x12e   :  { %v533_v37 = vpop.f32.mrb[0].mxu0 }
 0x12f   :  { %v535_v39 = vpop.f32.mrb[1].mxu0 }
 0x130   :  { %v540_v40 = vcombine.low %v533_v37, %v535_v39  ;;  %v212_v37 = vld [vmem:[%s211_s0] ss:$8 sm:$0x3]  ;;  %s234_s0 = scalar_lea.vmem [#allocation8], %s2300_s28 }
 0x131   :  { %v213_v39 = vadd.f32 %v212_v37, %v203_v36  ;;  %v295_v37 = vld [vmem:[%s294_s9] ss:$8 sm:$0x3] }
 0x132   :  { %v547_v42 = vrot.slane %v540_v40, %v2207_v38 }
 0x133   :  { %215 = vst.msk [vmem:[#allocation2 + $0x9] ss:$2 sm:$0x3] %vm2191_vm0, %v213_v39 }
 0x134   :  { %v549_v43 = vadd.f32 %v547_v42, %v462_v41 }
 0x136   :  { %557 = vrot.lane.b32.xlu0 %v549_v43, %s2450_s29  ;;  %v1657_v44 = vmul.f32 -1.442695, %v549_v43 }
 0x138   :  { %1845 = vpow2.f32 %v1657_v44 }
 0x13a   :  { %v697_v43 = vld [vmem:[#allocation2 + $0x8] sm:$0xf] }
 0x142   :  { %v1846_v45 = vpop.eup %1845 }
 0x143   :  { %v553_v46 = vadd.f32 1.0, %v1846_v45 }
 0x145   :  { %1847 = vrcp.f32 %v553_v46 }
 0x14f   :  { %v1848_v49 = vpop.eup %1847 }
 0x150   :  { %v562_v52 = vmul.f32 0.0, %v1848_v49  ;;  %v571_v56 = vrot.slane %v1848_v49, 2 }
 0x1a8   :  { %v558_v47 = vpop.permute.xlu0 %557 }
 0x1a9   :  { %v559_v48 = vrot.slane %v558_v47, 2 }
 0x1ab   :  { %1849 = vtanh.f32 %v559_v48 }
 0x1b5   :  { %v1850_v50 = vpop.eup %1849 }
 0x1b6   :  { %v563_v51 = vmul.f32 %v1850_v50, %v1848_v49 }
 0x1b8   :  { %565 = vrot.lane.b32.xlu0 %v563_v51, %s2450_s29 }
 0x22a   :  { %v566_v53 = vpop.permute.xlu0 %565 }
 0x22b   :  { %v2212_v54 = vadd.f32 %v566_v53, %v562_v52 }
 0x22d   :  { %1851 = vtanh.f32 %v2212_v54 }
 0x237   :  { %v1852_v55 = vpop.eup %1851 }
 0x238   :  { %574 = vrot.lane.b32.xlu1 %v1852_v55, %s2450_s29 }
 0x2aa   :  { %v575_v57 = vpop.permute.xlu1 %574 }
 0x2ab   :  { %v577_v58 = vmul.f32 %v575_v57, %v571_v56 }
 0x2ad   :  { %579 = vst.msk [vmem:[#allocation11] sm:$0x3] %vm578_vm1, %v577_v58  ;;  %1658 = vmatmul.mubr.msk.f32.vlgmr.msra.gmra.mrb[0].mxu1 %vm463_vm2, %v577_v58 }
 0x2ae   :  { %1755 = vmatpush1.bf16.msra.mxu1 %v2143_v8  ;;  %882 = vmatprep.mubr.f32.mxu1 %v2047_v7 }
 0x2af   :  { %1757 = vmatprep.subr.bf16.mxu1 %v2145_v9 }
 0x2b2   :  { %1759 = vmatpush1.bf16.msra.mxu1 %v2150_v14 }
 0x2b3   :  { %1761 = vmatprep.subr.bf16.mxu1 %v2154_v15 }
 0x2b6   :  { %1763 = vmatpush1.bf16.msra.mxu1 %v2158_v20 }
 0x2b7   :  { %1765 = vmatprep.subr.bf16.mxu1 %v2162_v21 }
 0x2ba   :  { %1767 = vmatpush1.bf16.msra.mxu1 %v2166_v24 }
 0x2bb   :  { %1785 = vmatprep.subr.bf16.mxu1 %v2139_v3 }
 0x380   :  { %v650_v1 = vpop.f32.mrb[0].mxu1 }
 0x381   :  { %v652_v2 = vpop.f32.mrb[1].mxu1 }
 0x382   :  { %v657_v4 = vcombine.low %v650_v1, %v652_v2 }
 0x384   :  { %v664_v6 = vrot.slane %v657_v4, %v2207_v38 }
 0x386   :  { %v666_v10 = vadd.f32 %v664_v6, %v580_v5 }
 0x388   :  { %674 = vrot.lane.b32.xlu1 %v666_v10, %s2450_s29  ;;  %v1659_v11 = vmul.f32 -1.442695, %v666_v10 }
 0x38a   :  { %1853 = vpow2.f32 %v1659_v11 }
 0x394   :  { %v1854_v12 = vpop.eup %1853 }
 0x395   :  { %v670_v13 = vadd.f32 1.0, %v1854_v12 }
 0x397   :  { %1855 = vrcp.f32 %v670_v13 }
 0x3a1   :  { %v1856_v18 = vpop.eup %1855 }
 0x3a2   :  { %v679_v23 = vmul.f32 %v1856_v18, %v2212_v54  ;;  %v688_v30 = vrot.slane %v1856_v18, 2 }
 0x3fa   :  { %v675_v16 = vpop.permute.xlu1 %674 }
 0x3fb   :  { %v676_v17 = vrot.slane %v675_v16, 2 }
 0x3fd   :  { %1857 = vtanh.f32 %v676_v17 }
 0x407   :  { %v1858_v19 = vpop.eup %1857 }
 0x408   :  { %v680_v22 = vmul.f32 %v1858_v19, %v1856_v18 }
 0x40a   :  { %682 = vrot.lane.b32.xlu0 %v680_v22, %s2450_s29 }
 0x47c   :  { %v683_v26 = vpop.permute.xlu0 %682 }
 0x47d   :  { %v2247_v28 = vadd.f32 %v683_v26, %v679_v23 }
 0x47f   :  { %1859 = vtanh.f32 %v2247_v28 }
 0x489   :  { %v1860_v29 = vpop.eup %1859 }
 0x48a   :  { %691 = vrot.lane.b32.xlu1 %v1860_v29, %s2450_s29 }
 0x4fc   :  { %v692_v31 = vpop.permute.xlu1 %691 }
 0x4fd   :  { %v694_v32 = vmul.f32 %v692_v31, %v688_v30 }
 0x4ff   :  { %696 = vst.msk [vmem:[#allocation11 + $0x2] sm:$0x3] %vm578_vm1, %v694_v32  ;;  %1660 = vmatmul.mubr.msk.f32.vlgmr.msra.gmra.mrb[2].mxu0 %vm463_vm2, %v694_v32 }
 0x500   :  { %1771 = vmatpush1.bf16.msra.mxu0 %v2143_v8  ;;  %999 = vmatprep.mubr.f32.mxu0 %v2047_v7 }
 0x501   :  { %1773 = vmatprep.subr.bf16.mxu0 %v2145_v9 }
 0x504   :  { %1775 = vmatpush1.bf16.msra.mxu0 %v2150_v14 }
 0x505   :  { %1777 = vmatprep.subr.bf16.mxu0 %v2154_v15 }
 0x508   :  { %1779 = vmatpush1.bf16.msra.mxu0 %v2158_v20 }
 0x509   :  { %1781 = vmatprep.subr.bf16.mxu0 %v2162_v21 }
 0x50c   :  { %1783 = vmatpush1.bf16.msra.mxu0 %v2166_v24 }
 0x50d   :  { %1801 = vmatprep.subr.bf16.mxu0 %v2139_v3 }
 0x5d2   :  { %v767_v40 = vpop.f32.mrb[2].mxu0 }
 0x5d3   :  { %v769_v41 = vpop.f32.mrb[3].mxu0 }
 0x5d4   :  { %v774_v42 = vcombine.low %v767_v40, %v769_v41 }
 0x5d6   :  { %v781_v44 = vrot.slane %v774_v42, %v2207_v38 }
 0x5d8   :  { %v783_v45 = vadd.f32 %v781_v44, %v697_v43 }
 0x5da   :  { %791 = vrot.lane.b32.xlu0 %v783_v45, %s2450_s29  ;;  %v1661_v46 = vmul.f32 -1.442695, %v783_v45 }
 0x5dc   :  { %1861 = vpow2.f32 %v1661_v46 }
 0x5e6   :  { %v1862_v47 = vpop.eup %1861 }
 0x5e7   :  { %v787_v48 = vadd.f32 1.0, %v1862_v47 }
 0x5e9   :  { %1863 = vrcp.f32 %v787_v48 }
 0x5f3   :  { %v1864_v51 = vpop.eup %1863 }
 0x5f4   :  { %v796_v54 = vmul.f32 %v1864_v51, %v2247_v28  ;;  %v805_v58 = vrot.slane %v1864_v51, 2 }
 0x64c   :  { %v792_v49 = vpop.permute.xlu0 %791 }
 0x64d   :  { %v793_v50 = vrot.slane %v792_v49, 2 }
 0x64f   :  { %1865 = vtanh.f32 %v793_v50 }
 0x659   :  { %v1866_v52 = vpop.eup %1865 }
 0x65a   :  { %v797_v53 = vmul.f32 %v1866_v52, %v1864_v51 }
 0x65c   :  { %799 = vrot.lane.b32.xlu1 %v797_v53, %s2450_s29 }
 0x6ce   :  { %v800_v55 = vpop.permute.xlu1 %799 }
 0x6cf   :  { %v2282_v56 = vadd.f32 %v800_v55, %v796_v54 }
 0x6d1   :  { %1867 = vtanh.f32 %v2282_v56 }
 0x6db   :  { %v1868_v57 = vpop.eup %1867 }
 0x6dc   :  { %808 = vrot.lane.b32.xlu0 %v1868_v57, %s2450_s29  ;;  %s1686_s29 = sshll.u32 %s241_s30, 4 }
 0x6dd   :  { %s2303_s5 = sadd.s32 %s1686_s29, %s244_s7  ;;  %s271_s29 = scalar_lea.vmem [#allocation7], %s2300_s28 }
 0x6de   :  { %s248_s8 = scalar_lea.vmem [#allocation7], %s2303_s5  ;;  %v272_v34 = vld [vmem:[%s271_s29] ss:$8 sm:$0x3]  ;;  %s303_s18 = scalar_lea.vmem [#allocation8], %s2303_s5 }
 0x6df   :  { %v249_v63 = vld [vmem:[%s248_s8] ss:$8 sm:$0x3]  ;;  %v282_v36 = vadd.f32 %v281_v35, %v272_v34  ;;  %s317_s5 = scalar_lea.vmem [#allocation7], %s2265_s2  ;;  %s372_s2 = scalar_lea.vmem [#allocation8], %s2227_s10 }
 0x6e0   :  { %v259_v1 = vadd.f32 %v258_v0, %v249_v63  ;;  %v304_v39 = vld [vmem:[%s303_s18] ss:$8 sm:$0x3]  ;;  %s409_s10 = scalar_lea.vmem [#allocation7], %s2188_s17  ;;  %s1445_s17 = sshll.u32 %s2050_s14, 4  ;;  %s1446_s17 = int_to_ptr.vmem [resolvable:$true] %s1445_s17 }
 0x6e1   :  { %284 = vst.msk [vmem:[#allocation2 + $0x10] ss:$2 sm:$0x3] %vm2191_vm0, %v282_v36  ;;  %v305_v40 = vadd.f32 %v304_v39, %v295_v37  ;;  %v350_v0 = vld [vmem:[%s349_s22] ss:$8 sm:$0x3]  ;;  %p1992_p2 = scmp.lt.s32.totalorder %s1446_s17, %s1446_s17 }
 0x6e2   :  { %261 = vst.msk [vmem:[#allocation2 + $0xd] ss:$2 sm:$0x3] %vm2191_vm0, %v259_v1  ;;  %v364_v35 = vld [vmem:[%s363_s11] ss:$8 sm:$0x3] }
 0x6e3   :  { %307 = vst.msk [vmem:[#allocation2 + $0x11] ss:$2 sm:$0x3] %vm2191_vm0, %v305_v40  ;;  %v373_v36 = vld [vmem:[%s372_s2] ss:$8 sm:$0x3] }
 0x6e4   :  { %v374_v37 = vadd.f32 %v373_v36, %v364_v35  ;;  %v387_v39 = vld [vmem:[%s386_s25] ss:$8 sm:$0x3]  ;;  %s1987_s23 = scalar_lea.vmem %s1446_s17, 32 }
 0x6e5   :  { %v396_v40 = vld [vmem:[%s395_s3] ss:$8 sm:$0x3]  ;;  %p1988_p1 = scmp.ne.s32.totalorder %s1446_s17, %s1987_s23  ;;  %p1993_p3 = scmp.lt.s32.totalorder %s1987_s23, %s1987_s23 }
 0x6e6   :  { %376 = vst.msk [vmem:[#allocation2 + $0x18] ss:$2 sm:$0x3] %vm2191_vm0, %v374_v37 }
 0x6e7   :  { %p1994_p4 = por %p1993_p3, %p1992_p2 }
 0x6e9   :  { %p1995_p5 = pnand %p1994_p4, %p1988_p1 }
 0x6ea   :  { %v931_v44 = vld [vmem:[#allocation2 + $0x10] sm:$0xf] }
 0x74e   :  { %v809_v59 = vpop.permute.xlu0 %808 }
 0x74f   :  { %v811_v60 = vmul.f32 %v809_v59, %v805_v58 }
 0x751   :  { %813 = vst.msk [vmem:[#allocation11 + $0x4] sm:$0x3] %vm578_vm1, %v811_v60  ;;  %1662 = vmatmul.mubr.msk.f32.vlgmr.msra.gmra.mrb[2].mxu1 %vm463_vm2, %v811_v60 }
 0x752   :  { %1787 = vmatpush1.bf16.msra.mxu1 %v2143_v8  ;;  %1116 = vmatprep.mubr.f32.mxu1 %v2047_v7 }
 0x753   :  { %1789 = vmatprep.subr.bf16.mxu1 %v2145_v9 }
 0x756   :  { %1791 = vmatpush1.bf16.msra.mxu1 %v2150_v14 }
 0x757   :  { %1793 = vmatprep.subr.bf16.mxu1 %v2154_v15 }
 0x75a   :  { %1795 = vmatpush1.bf16.msra.mxu1 %v2158_v20 }
 0x75b   :  { %1797 = vmatprep.subr.bf16.mxu1 %v2162_v21 }
 0x75e   :  { %1799 = vmatpush1.bf16.msra.mxu1 %v2166_v24 }
 0x75f   :  { %1817 = vmatprep.subr.bf16.mxu1 %v2139_v3  ;;  %v235_v3 = vld [vmem:[%s234_s0] ss:$8 sm:$0x3] }
 0x760   :  { %v236_v62 = vadd.f32 %v235_v3, %v226_v61  ;;  %v2343_v3 = vand.u32 127, %v96_v25 }
 0x762   :  { %238 = vst.msk [vmem:[#allocation2 + $0xc] ss:$2 sm:$0x3] %vm2191_vm0, %v236_v62  ;;  %vm1402_vm3 = vcmp.lt.s32.totalorder %v2343_v3, 32 }
 0x769   :  { %v814_v6 = vld [vmem:[#allocation2 + $0xc] sm:$0xf] }
 0x824   :  { %v884_v2 = vpop.f32.mrb[2].mxu1 }
 0x825   :  { %v886_v4 = vpop.f32.mrb[3].mxu1 }
 0x826   :  { %v891_v5 = vcombine.low %v884_v2, %v886_v4 }
 0x828   :  { %v898_v10 = vrot.slane %v891_v5, %v2207_v38 }
 0x82a   :  { %v900_v11 = vadd.f32 %v898_v10, %v814_v6 }
 0x82c   :  { %908 = vrot.lane.b32.xlu1 %v900_v11, %s2458_s4  ;;  %v1663_v12 = vmul.f32 -1.442695, %v900_v11 }
 0x82e   :  { %1869 = vpow2.f32 %v1663_v12 }
 0x838   :  { %v1870_v13 = vpop.eup %1869 }
 0x839   :  { %v904_v16 = vadd.f32 1.0, %v1870_v13 }
 0x83b   :  { %1871 = vrcp.f32 %v904_v16 }
 0x845   :  { %v1872_v19 = vpop.eup %1871 }
 0x846   :  { %v913_v26 = vmul.f32 %v1872_v19, %v2282_v56  ;;  %v922_v31 = vrot.slane %v1872_v19, 2 }
 0x89e   :  { %v909_v17 = vpop.permute.xlu1 %908 }
 0x89f   :  { %v910_v18 = vrot.slane %v909_v17, 2 }
 0x8a1   :  { %1873 = vtanh.f32 %v910_v18 }
 0x8ab   :  { %v1874_v22 = vpop.eup %1873 }
 0x8ac   :  { %v914_v23 = vmul.f32 %v1874_v22, %v1872_v19 }
 0x8ae   :  { %916 = vrot.lane.b32.xlu0 %v914_v23, %s2458_s4 }
 0x920   :  { %v917_v28 = vpop.permute.xlu0 %916 }
 0x921   :  { %v919_v29 = vadd.f32 %v917_v28, %v913_v26 }
 0x923   :  { %1875 = vtanh.f32 %v919_v29 }
 0x92d   :  { %v1876_v30 = vpop.eup %1875 }
 0x92e   :  { %925 = vrot.lane.b32.xlu1 %v1876_v30, %s2458_s4 }
 0x9a0   :  { %v926_v32 = vpop.permute.xlu1 %925 }
 0x9a1   :  { %v928_v33 = vmul.f32 %v926_v32, %v922_v31  ;;  %v1415_v31 = vld [vmem:[#allocation11 + $0x4] sm:$0x3] }
 0x9a3   :  { %930 = vst.msk [vmem:[#allocation11 + $0x6] sm:$0x3] %vm578_vm1, %v928_v33  ;;  %1664 = vmatmul.mubr.msk.f32.vlgmr.msra.gmra.mrb[4].mxu0 %vm463_vm2, %v928_v33 }
 0x9a4   :  { %1803 = vmatpush1.bf16.msra.mxu0 %v2143_v8  ;;  %1233 = vmatprep.mubr.f32.mxu0 %v2047_v7 }
 0x9a5   :  { %1805 = vmatprep.subr.bf16.mxu0 %v2145_v9 }
 0x9a8   :  { %1807 = vmatpush1.bf16.msra.mxu0 %v2150_v14 }
 0x9a9   :  { %1809 = vmatprep.subr.bf16.mxu0 %v2154_v15 }
 0x9aa   :  { %v1421_v62 = vld [vmem:[#allocation11 + $0x6] sm:$0x3] }
 0x9ac   :  { %1811 = vmatpush1.bf16.msra.mxu0 %v2158_v20 }
 0x9ad   :  { %1813 = vmatprep.subr.bf16.mxu0 %v2162_v21 }
 0x9b0   :  { %1815 = vmatpush1.bf16.msra.mxu0 %v2166_v24 }
 0xa76   :  { %v1001_v41 = vpop.f32.mrb[4].mxu0 }
 0xa77   :  { %v1003_v42 = vpop.f32.mrb[5].mxu0 }
 0xa78   :  { %v1008_v43 = vcombine.low %v1001_v41, %v1003_v42  ;;  %v397_v41 = vadd.f32 %v396_v40, %v387_v39 }
 0xa7a   :  { %v1015_v45 = vrot.slane %v1008_v43, %v2207_v38  ;;  %399 = vst.msk [vmem:[#allocation2 + $0x19] ss:$2 sm:$0x3] %vm2191_vm0, %v397_v41 }
 0xa7c   :  { %v1017_v46 = vadd.f32 %v1015_v45, %v931_v44 }
 0xa7e   :  { %1025 = vrot.lane.b32.xlu0 %v1017_v46, %s2458_s4  ;;  %v1665_v47 = vmul.f32 -1.442695, %v1017_v46 }
 0xa80   :  { %1877 = vpow2.f32 %v1665_v47 }
 0xa81   :  { %v1165_v45 = vld [vmem:[#allocation2 + $0x18] sm:$0xf] }
 0xa8a   :  { %v1878_v48 = vpop.eup %1877 }
 0xa8b   :  { %v1021_v49 = vadd.f32 1.0, %v1878_v48 }
 0xa8d   :  { %1879 = vrcp.f32 %v1021_v49 }
 0xa97   :  { %v1880_v52 = vpop.eup %1879 }
 0xa98   :  { %v1030_v55 = vmul.f32 %v1880_v52, %v919_v29  ;;  %v1039_v59 = vrot.slane %v1880_v52, 2 }
 0xaf0   :  { %v1026_v50 = vpop.permute.xlu0 %1025 }
 0xaf1   :  { %v1027_v51 = vrot.slane %v1026_v50, 2 }
 0xaf3   :  { %1881 = vtanh.f32 %v1027_v51 }
 0xafd   :  { %v1882_v53 = vpop.eup %1881 }
 0xafe   :  { %v1031_v54 = vmul.f32 %v1882_v53, %v1880_v52 }
 0xb00   :  { %1033 = vrot.lane.b32.xlu1 %v1031_v54, %s2458_s4 }
 0xb72   :  { %v1034_v56 = vpop.permute.xlu1 %1033 }
 0xb73   :  { %v1036_v57 = vadd.f32 %v1034_v56, %v1030_v55 }
 0xb75   :  { %1883 = vtanh.f32 %v1036_v57 }
 0xb7f   :  { %v1884_v58 = vpop.eup %1883 }
 0xb80   :  { %1042 = vrot.lane.b32.xlu0 %v1884_v58, %s2458_s4 }
 0xbf2   :  { %v1043_v60 = vpop.permute.xlu0 %1042 }
 0xbf3   :  { %v1045_v61 = vmul.f32 %v1043_v60, %v1039_v59 }
 0xbf5   :  { %1047 = vst.msk [vmem:[#allocation11 + $0x8] sm:$0x3] %vm578_vm1, %v1045_v61  ;;  %1666 = vmatmul.mubr.msk.f32.vlgmr.msra.gmra.mrb[4].mxu1 %vm463_vm2, %v1045_v61 }
 0xbf6   :  { %1819 = vmatpush1.bf16.msra.mxu1 %v2143_v8  ;;  %1350 = vmatprep.mubr.f32.mxu1 %v2047_v7  ;;  %v318_v7 = vld [vmem:[%s317_s5] ss:$8 sm:$0x3] }
 0xbf7   :  { %1821 = vmatprep.subr.bf16.mxu1 %v2145_v9  ;;  %v327_v9 = vld [vmem:[%s326_s19] ss:$8 sm:$0x3] }
 0xbfa   :  { %1823 = vmatpush1.bf16.msra.mxu1 %v2150_v14  ;;  %v328_v14 = vadd.f32 %v327_v9, %v318_v7  ;;  %v410_v9 = vld [vmem:[%s409_s10] ss:$8 sm:$0x3] }
 0xbfb   :  { %1825 = vmatprep.subr.bf16.mxu1 %v2154_v15  ;;  %v341_v15 = vld [vmem:[%s340_s21] ss:$8 sm:$0x3] }
 0xbfc   :  { %v1422_v63 = vld [vmem:[#allocation11 + $0x8] sm:$0x3]  ;;  %330 = vst.msk [vmem:[#allocation2 + $0x14] ss:$2 sm:$0x3] %vm2191_vm0, %v328_v14  ;;  %v351_v1 = vadd.f32 %v350_v0, %v341_v15 }
 0xbfd   :  { %v1423_v25 = vsel %vm1402_vm3, %v1421_v62, %v1422_v63  ;;  %v1425_v8 = vsel %vm1402_vm3, %v1422_v63, %v1421_v62  ;;  %v1409_v63 = vld [vmem:[#allocation11 + $0x2] sm:$0x3]  ;;  %v419_v14 = vld [vmem:[%s418_s15] ss:$8 sm:$0x3] }
 0xbfe   :  { %1424 = vst.msk [vmem:[#allocation11 + $0x6] sm:$0x3] %vm578_vm1, %v1423_v25  ;;  %1426 = vst.msk [vmem:[#allocation11 + $0x8] sm:$0x3] %vm578_vm1, %v1425_v8  ;;  %1827 = vmatpush1.bf16.msra.mxu1 %v2158_v20  ;;  %v420_v15 = vadd.f32 %v419_v14, %v410_v9 }
 0xbff   :  { %1829 = vmatprep.subr.bf16.mxu1 %v2162_v21  ;;  %353 = vst.msk [vmem:[#allocation2 + $0x15] ss:$2 sm:$0x3] %vm2191_vm0, %v351_v1  ;;  %v433_v0 = vld [vmem:[%s432_s20] ss:$8 sm:$0x3] }
 0xc00   :  { %v442_v1 = vld [vmem:[%s441_s26] ss:$8 sm:$0x3]  ;;  %422 = vst.msk [vmem:[#allocation2 + $0x1c] ss:$2 sm:$0x3] %vm2191_vm0, %v420_v15 }
 0xc02   :  { %1831 = vmatpush1.bf16.msra.mxu1 %v2166_v24 }
 0xc06   :  { %v1048_v24 = vld [vmem:[#allocation2 + $0x14] sm:$0xf] }
 0xcc8   :  { %v1118_v20 = vpop.f32.mrb[4].mxu1 }
 0xcc9   :  { %v1120_v21 = vpop.f32.mrb[5].mxu1 }
 0xcca   :  { %v1125_v2 = vcombine.low %v1118_v20, %v1120_v21  ;;  %v443_v20 = vadd.f32 %v442_v1, %v433_v0 }
 0xccc   :  { %v1132_v4 = vrot.slane %v1125_v2, %v2207_v38  ;;  %445 = vst.msk [vmem:[#allocation2 + $0x1d] ss:$2 sm:$0x3] %vm2191_vm0, %v443_v20 }
 0xcce   :  { %v1134_v5 = vadd.f32 %v1132_v4, %v1048_v24 }
 0xcd0   :  { %1142 = vrot.lane.b32.xlu1 %v1134_v5, %s2458_s4  ;;  %v1667_v6 = vmul.f32 -1.442695, %v1134_v5 }
 0xcd2   :  { %1885 = vpow2.f32 %v1667_v6 }
 0xcd3   :  { %v1282_v4 = vld [vmem:[#allocation2 + $0x1c] sm:$0xf] }
 0xcdc   :  { %v1886_v10 = vpop.eup %1885 }
 0xcdd   :  { %v1138_v11 = vadd.f32 1.0, %v1886_v10 }
 0xcdf   :  { %1887 = vrcp.f32 %v1138_v11 }
 0xce9   :  { %v1888_v16 = vpop.eup %1887 }
 0xcea   :  { %v1147_v19 = vmul.f32 %v1888_v16, %v1036_v57  ;;  %v1156_v28 = vrot.slane %v1888_v16, 2 }
 0xd42   :  { %v1143_v12 = vpop.permute.xlu1 %1142 }
 0xd43   :  { %v1144_v13 = vrot.slane %v1143_v12, 2 }
 0xd45   :  { %1889 = vtanh.f32 %v1144_v13 }
 0xd4f   :  { %v1890_v17 = vpop.eup %1889 }
 0xd50   :  { %v1148_v18 = vmul.f32 %v1890_v17, %v1888_v16 }
 0xd52   :  { %1150 = vrot.lane.b32.xlu0 %v1148_v18, %s2458_s4 }
 0xdc4   :  { %v1151_v22 = vpop.permute.xlu0 %1150 }
 0xdc5   :  { %v1153_v23 = vadd.f32 %v1151_v22, %v1147_v19 }
 0xdc7   :  { %1891 = vtanh.f32 %v1153_v23 }
 0xdd1   :  { %v1892_v26 = vpop.eup %1891 }
 0xdd2   :  { %1159 = vrot.lane.b32.xlu1 %v1892_v26, %s2458_s4 }
 0xe44   :  { %v1160_v29 = vpop.permute.xlu1 %1159 }
 0xe45   :  { %v1162_v30 = vmul.f32 %v1160_v29, %v1156_v28 }
 0xe47   :  { %1164 = vst.msk [vmem:[#allocation11 + $0xa] sm:$0x3] %vm578_vm1, %v1162_v30  ;;  %1668 = vmatmul.mubr.msk.f32.vlgmr.msra.gmra.mrb[6].mxu0 %vm463_vm2, %v1162_v30 }
 0xe4e   :  { %v1416_v32 = vld [vmem:[#allocation11 + $0xa] sm:$0x3] }
 0xe4f   :  { %v1417_v33 = vsel %vm1402_vm3, %v1415_v31, %v1416_v32  ;;  %v1419_v34 = vsel %vm1402_vm3, %v1416_v32, %v1415_v31 }
 0xe50   :  { %1418 = vst.msk [vmem:[#allocation11 + $0x4] sm:$0x3] %vm578_vm1, %v1417_v33  ;;  %1420 = vst.msk [vmem:[#allocation11 + $0xa] sm:$0x3] %vm578_vm1, %v1419_v34 }
 0xf1a   :  { %v1235_v42 = vpop.f32.mrb[6].mxu0 }
 0xf1b   :  { %v1237_v43 = vpop.f32.mrb[7].mxu0 }
 0xf1c   :  { %v1242_v44 = vcombine.low %v1235_v42, %v1237_v43 }
 0xf1e   :  { %v1249_v46 = vrot.slane %v1242_v44, %v2207_v38 }
 0xf20   :  { %v1251_v47 = vadd.f32 %v1249_v46, %v1165_v45 }
 0xf22   :  { %1259 = vrot.lane.b32.xlu0 %v1251_v47, %s2458_s4  ;;  %v1669_v48 = vmul.f32 -1.442695, %v1251_v47 }
 0xf24   :  { %1893 = vpow2.f32 %v1669_v48 }
 0xf2e   :  { %v1894_v49 = vpop.eup %1893 }
 0xf2f   :  { %v1255_v50 = vadd.f32 1.0, %v1894_v49 }
 0xf31   :  { %1895 = vrcp.f32 %v1255_v50 }
 0xf3b   :  { %v1896_v53 = vpop.eup %1895 }
 0xf3c   :  { %v1264_v56 = vmul.f32 %v1896_v53, %v1153_v23  ;;  %v1273_v60 = vrot.slane %v1896_v53, 2 }
 0xf94   :  { %v1260_v51 = vpop.permute.xlu0 %1259 }
 0xf95   :  { %v1261_v52 = vrot.slane %v1260_v51, 2 }
 0xf97   :  { %1897 = vtanh.f32 %v1261_v52 }
 0xfa1   :  { %v1898_v54 = vpop.eup %1897 }
 0xfa2   :  { %v1265_v55 = vmul.f32 %v1898_v54, %v1896_v53 }
 0xfa4   :  { %1267 = vrot.lane.b32.xlu1 %v1265_v55, %s2458_s4 }
0x1016   :  { %v1268_v57 = vpop.permute.xlu1 %1267 }
0x1017   :  { %v1270_v58 = vadd.f32 %v1268_v57, %v1264_v56 }
0x1019   :  { %1899 = vtanh.f32 %v1270_v58 }
0x1023   :  { %v1900_v59 = vpop.eup %1899 }
0x1024   :  { %1276 = vrot.lane.b32.xlu0 %v1900_v59, %s2458_s4 }
0x1096   :  { %v1277_v61 = vpop.permute.xlu0 %1276 }
0x1097   :  { %v1279_v62 = vmul.f32 %v1277_v61, %v1273_v60 }
0x1099   :  { %1281 = vst.msk [vmem:[#allocation11 + $0xc] sm:$0x3] %vm578_vm1, %v1279_v62  ;;  %1670 = vmatmul.mubr.msk.f32.vlgmr.msra.gmra.mrb[6].mxu1 %vm463_vm2, %v1279_v62 }
0x10a0   :  { %v1410_v25 = vld [vmem:[#allocation11 + $0xc] sm:$0x3] }
0x10a1   :  { %v1411_v8 = vsel %vm1402_vm3, %v1409_v63, %v1410_v25  ;;  %v1413_v7 = vsel %vm1402_vm3, %v1410_v25, %v1409_v63 }
0x10a2   :  { %1412 = vst.msk [vmem:[#allocation11 + $0x2] sm:$0x3] %vm578_vm1, %v1411_v8  ;;  %1414 = vst.msk [vmem:[#allocation11 + $0xc] sm:$0x3] %vm578_vm1, %v1413_v7 }
0x116c   :  { %v1352_v21 = vpop.f32.mrb[6].mxu1 }
0x116d   :  { %v1354_v2 = vpop.f32.mrb[7].mxu1 }
0x116e   :  { %v1359_v24 = vcombine.low %v1352_v21, %v1354_v2 }
0x1170   :  { %v1366_v5 = vrot.slane %v1359_v24, %v2207_v38 }
0x1172   :  { %v1368_v6 = vadd.f32 %v1366_v5, %v1282_v4 }
0x1174   :  { %1376 = vrot.lane.b32.xlu1 %v1368_v6, %s2458_s4  ;;  %v1671_v10 = vmul.f32 -1.442695, %v1368_v6 }
0x1176   :  { %1901 = vpow2.f32 %v1671_v10 }
0x1180   :  { %v1902_v11 = vpop.eup %1901 }
0x1181   :  { %v1372_v12 = vadd.f32 1.0, %v1902_v11 }
0x1183   :  { %1903 = vrcp.f32 %v1372_v12 }
0x118d   :  { %v1904_v17 = vpop.eup %1903 }
0x118e   :  { %v1381_v19 = vmul.f32 %v1904_v17, %v1270_v58  ;;  %v1390_v26 = vrot.slane %v1904_v17, 2 }
0x11e6   :  { %v1377_v13 = vpop.permute.xlu1 %1376 }
0x11e7   :  { %v1378_v16 = vrot.slane %v1377_v13, 2 }
0x11e9   :  { %1905 = vtanh.f32 %v1378_v16 }
0x11f3   :  { %v1906_v27 = vpop.eup %1905 }
0x11f4   :  { %v1382_v18 = vmul.f32 %v1906_v27, %v1904_v17 }
0x11f6   :  { %1384 = vrot.lane.b32.xlu0 %v1382_v18, %s2458_s4 }
0x1268   :  { %v1385_v22 = vpop.permute.xlu0 %1384 }
0x1269   :  { %v1387_v23 = vadd.f32 %v1385_v22, %v1381_v19 }
0x126b   :  { %1907 = vtanh.f32 %v1387_v23 }
0x1275   :  { %v1908_v38 = vpop.eup %1907 }
0x1276   :  { %1393 = vrot.lane.b32.xlu1 %v1908_v38, %s2458_s4 }
0x12e8   :  { %v1394_v28 = vpop.permute.xlu1 %1393 }
0x12e9   :  { %v1396_v29 = vmul.f32 %v1394_v28, %v1390_v26 }
0x12eb   :  { %1398 = vst.msk [vmem:[#allocation11 + $0xe] sm:$0x3] %vm578_vm1, %v1396_v29  ;;  %1399 = vst.msk [vmem:[#allocation12] sm:$0x3] %vm578_vm1, %v1396_v29 }
0x12ec   :  { %1998 = shalt.err (!%p1995_p5)
}
0x12ed   :  { %s2459_s28 = sld [smem:[#allocation20_spill]] }
0x12f3   :  { %s1999_s30 = scalar_lea.hbm %s2459_s28, 32 }
0x12f4   :  { %p2000_p6 = scmp.ne.s32.totalorder %s2459_s28, %s1999_s30  ;;  %p2003_p7 = scmp.lt.u32.totalorder %s1999_s30, %s2459_s28 }
0x12f6   :  { %p2005_p8 = pnand %p2003_p7, %p2000_p6 }
0x12f8   :  { %2008 = shalt.err (!%p2005_p8)
}
0x12f9   :  { %1448 = dma.vmem_to_hbm [thread:$0]  %s1446_s17, 32, %s2459_s28, [#allocation13]   ;;  %v1403_v30 = vld [vmem:[#allocation11] sm:$0x3]  ;;  %v1404_v31 = vld [vmem:[#allocation11 + $0xe] sm:$0x3] }
0x12fa   :  { %s2051_s16 = smov [#allocation11]   ;;  %v1405_v32 = vsel %vm1402_vm3, %v1403_v30, %v1404_v31  ;;  %v1407_v33 = vsel %vm1402_vm3, %v1404_v31, %v1403_v30 }
0x12fb   :  { %s1432_s4 = sshll.u32 %s2051_s16, 4  ;;  %1406 = vst.msk [vmem:[#allocation11] sm:$0x3] %vm578_vm1, %v1405_v32  ;;  %1408 = vst.msk [vmem:[#allocation11 + $0xe] sm:$0x3] %vm578_vm1, %v1407_v33  ;;  %s1433_s4 = int_to_ptr.vmem [resolvable:$true] %s1432_s4 }
0x12fc   :  { %s2009_s29 = scalar_lea.vmem %s1433_s4, 256  ;;  %p2014_p10 = scmp.lt.s32.totalorder %s1433_s4, %s1433_s4 }
0x12fd   :  { %p2010_p9 = scmp.ne.s32.totalorder %s1433_s4, %s2009_s29  ;;  %p2015_p11 = scmp.lt.s32.totalorder %s2009_s29, %s2009_s29 }
0x12ff   :  { %p2016_p12 = por %p2015_p11, %p2014_p10 }
0x1301   :  { %p2017_p13 = pnand %p2016_p12, %p2010_p9 }
0x1303   :  { %2020 = shalt.err (!%p2017_p13)
}
0x1304   :  { %s2460_s18 = sld [smem:[#allocation19_spill]] }
0x130a   :  { %s2021_s5 = scalar_lea.hbm %s2460_s18, 256 }
0x130b   :  { %p2022_p0 = scmp.ne.s32.totalorder %s2460_s18, %s2021_s5  ;;  %p2025_p1 = scmp.lt.u32.totalorder %s2021_s5, %s2460_s18 }
0x130d   :  { %p2027_p2 = pnand %p2025_p1, %p2022_p0 }
0x130f   :  { %2030 = shalt.err (!%p2027_p2)
}
0x1310   :  { %s2052_s2 = smov 32   ;;  %s2053_s25 = smov 2  }
0x1311   :  { %1438 = dma.vmem_to_hbm [thread:$0]  %s1433_s4, 256, %s2460_s18, [#allocation5], %s2052_s2, %s2052_s2, %s2053_s25  }
0x1312   :  { %2037 = dma.done.wait [#allocation5], 256  }
0x1313   :  { %2038 = vsyncadd [#allocation5], 4294967040 }
0x1314   :  { %2039 = dma.done.wait [#allocation13], 32  }
0x1315   :  { %2040 = vsyncadd [#allocation13], 4294967264 }
0x1316   :  { %1455 = vsyncpa [#allocation4], 1 }
0x1317   :  { %1456 = vsyncpa [#allocation9], 1 }
0x1318   :  { %1457 = vsyncpa [#allocation5], 1 }
0x1319   :  { %1458 = vsyncpa [#allocation13], 1 }
0x131a   :  { %1459 = vsyncpa [#allocation6], 1 }

</bundles_post_ra>
